<compile_context>
chip_gen: v5e
topology: v5e:2x2
jax: 0.10.0
libtpu: 0.0.40
codegen_flags: <defaults>
</compile_context>

<pallas_src>
import functools

import jax
import jax.numpy as jnp
import numpy as np
from jax.experimental import pallas as pl
from jax.experimental.pallas import tpu as pltpu


# ------------------------------ Pallas kernel --------------------------------

def _conv3x3_bias_relu(padded, w_ref, b_ref, *, bn, ho, wo, cin):
    """padded: (bn, ho+2, wo+2, cin) f32 value; w_ref: (9*cin, cout) bf16;
    b_ref: (1, cout) f32.  Returns (bn*ho*wo, cout) f32 = ReLU(im2col @ w + b)
    using a single MXU dot (contraction = 9*cin)."""
    taps = [padded[:, dy:dy + ho, dx:dx + wo, :]       # 9 static shifted views (VMEM only)
            for dy in range(3) for dx in range(3)]
    t = jnp.concatenate(taps, axis=-1)                 # (bn, ho, wo, 9*cin)
    t = t.reshape(bn * ho * wo, 9 * cin).astype(jnp.bfloat16)
    acc = jnp.dot(t, w_ref[...], preferred_element_type=jnp.float32)
    return jnp.maximum(acc + b_ref[...], 0.0)          # bias + ReLU in f32


def _zero_pad_hw(x):
    """(bn, h, w, c) -> (bn, h+2, w+2, c) zero halo, built with concatenates (VMEM)."""
    bn, h, w, c = x.shape
    zr = jnp.zeros((bn, 1, w, c), x.dtype)
    x = jnp.concatenate([zr, x, zr], axis=1)
    zc = jnp.zeros((bn, h + 2, 1, c), x.dtype)
    return jnp.concatenate([zc, x, zc], axis=2)


def _downconv_kernel(x_ref, w1_ref, b1_ref, w2_ref, b2_ref, o_ref,
                     *, bn, ho, wo, cin, cmid, cout):
    hp, wp = ho + 2, wo + 2
    # x_ref block: (bn*(ho+2), wo+2, 4*cin); minor axis = (h-parity, w-parity, cin).
    x4 = x_ref[...].reshape(bn, hp, wp, 4 * cin)
    # 2x2 max pool == max over the 4 parity groups (pure lane slices + VPU max).
    pp = jnp.maximum(
        jnp.maximum(x4[..., 0 * cin:1 * cin], x4[..., 1 * cin:2 * cin]),
        jnp.maximum(x4[..., 2 * cin:3 * cin], x4[..., 3 * cin:4 * cin]))
    # pp is the zero-padded pooled image (the halo came from the host-side pad).

    a1 = _conv3x3_bias_relu(pp, w1_ref, b1_ref, bn=bn, ho=ho, wo=wo, cin=cin)
    a1p = _zero_pad_hw(a1.reshape(bn, ho, wo, cmid))          # halo for conv2
    a2 = _conv3x3_bias_relu(a1p, w2_ref, b2_ref, bn=bn, ho=ho, wo=wo, cin=cmid)

    o_ref[...] = a2.reshape(bn * ho, wo, cout).astype(o_ref.dtype)


# ------------------------------ host wrapper ----------------------------------

def downconv_forward(x_nchw, params):
    N, Cin, H, W = x_nchw.shape
    assert H % 2 == 0 and W % 2 == 0, "DownConv expects even spatial dims"
    Ho, Wo = H // 2, W // 2
    Hp, Wp = Ho + 2, Wo + 2
    Cmid = params['w1'].shape[-1]
    Cout = params['w2'].shape[-1]

    # Batch tile: grow rows-per-MXU-dot toward >=256 while keeping >=2 grid steps
    # (so both TensorCores stay busy on v7x) and N % bn == 0.
    bn = 1
    while (N % (bn * 2) == 0) and (N // (bn * 2) >= 2) and (bn * Ho * Wo < 256):
        bn *= 2

    # NCHW -> NHWC, zero-pad H/W by 2 (pooling the pad == conv's pad=1 halo),
    # fold the 2x2 pool window + channels into the minor (lane) axis.
    x = jnp.transpose(x_nchw, (0, 2, 3, 1)).astype(jnp.float32)
    x = jnp.pad(x, ((0, 0), (2, 2), (2, 2), (0, 0)))
    x = x.reshape(N, Hp, 2, Wp, 2, Cin).transpose(0, 1, 3, 2, 4, 5)
    x = x.reshape(N * Hp, Wp, 4 * Cin)

    # Weight rows ordered (kh, kw, cin) to match the in-kernel tap concat order.
    w1 = params['w1'].reshape(9 * Cin, Cmid).astype(jnp.bfloat16)
    b1 = params['b1'].reshape(1, Cmid).astype(jnp.float32)
    w2 = params['w2'].reshape(9 * Cmid, Cout).astype(jnp.bfloat16)
    b2 = params['b2'].reshape(1, Cout).astype(jnp.float32)

    kernel = functools.partial(_downconv_kernel, bn=bn, ho=Ho, wo=Wo,
                               cin=Cin, cmid=Cmid, cout=Cout)
    out = pl.pallas_call(
        kernel,
        out_shape=jax.ShapeDtypeStruct((N * Ho, Wo, Cout), jnp.float32),
        grid_spec=pltpu.PrefetchScalarGridSpec(
            num_scalar_prefetch=0,
            grid=(N // bn,),                            # bn batch elements per step
            in_specs=[
                pl.BlockSpec((bn * Hp, Wp, 4 * Cin), lambda i: (i, 0, 0)),
                pl.BlockSpec((9 * Cin, Cmid), lambda i: (0, 0)),   # resident weights
                pl.BlockSpec((1, Cmid), lambda i: (0, 0)),
                pl.BlockSpec((9 * Cmid, Cout), lambda i: (0, 0)),
                pl.BlockSpec((1, Cout), lambda i: (0, 0)),
            ],
            out_specs=pl.BlockSpec((bn * Ho, Wo, Cout), lambda i: (i, 0, 0)),
        ),
        compiler_params=pltpu.CompilerParams(
            dimension_semantics=("parallel",),           # shards batch across TCs (v7x)
            vmem_limit_bytes=32 * 1024 * 1024,           # tiny working set; generous cap
        ),
    )(x, w1, b1, w2, b2)

    return jnp.transpose(out.reshape(N, Ho, Wo, Cout), (0, 3, 1, 2))   # -> NCHW


# ------------------------------ params & reference ----------------------------

def init_downconv_params(key, in_channels, out_channels):
    k1, k2, k3, k4 = jax.random.split(key, 4)
    s1 = (2.0 / (9 * in_channels)) ** 0.5
    s2 = (2.0 / (9 * out_channels)) ** 0.5
    return {
        'w1': s1 * jax.random.normal(k1, (3, 3, in_channels, out_channels), jnp.float32),
        'b1': 0.05 * jax.random.normal(k2, (out_channels,), jnp.float32),
        'w2': s2 * jax.random.normal(k3, (3, 3, out_channels, out_channels), jnp.float32),
        'b2': 0.05 * jax.random.normal(k4, (out_channels,), jnp.float32),
    }


def downconv_reference(x_nchw, params):
    x = jnp.transpose(x_nchw, (0, 2, 3, 1)).astype(jnp.float32)
    N, H, W, C = x.shape
    x = x.reshape(N, H // 2, 2, W // 2, 2, C).max(axis=(2, 4))        # MaxPool2d(2)
    for wk, bk in (('w1', 'b1'), ('w2', 'b2')):
        y = jax.lax.conv_general_dilated(
            x, params[wk], (1, 1), ((1, 1), (1, 1)),
            dimension_numbers=('NHWC', 'HWIO', 'NHWC'),
            precision=jax.lax.Precision.HIGHEST)
        x = jnp.maximum(y + params[bk], 0.0)
    return jnp.transpose(x, (0, 3, 1, 2))


# ----------------------------------- main --------------------------------------

if __name__ == "__main__":
    key = jax.random.PRNGKey(0)
    pkey, xkey = jax.random.split(key)

    in_channels, out_channels = 4, 32
    params = init_downconv_params(pkey, in_channels, out_channels)
    x = jax.random.normal(xkey, (2, in_channels, 16, 16), jnp.float32)   # NCHW

    out = jax.block_until_ready(jax.jit(downconv_forward)(x, params))
    assert out.shape == (2, out_channels, 8, 8), out.shape

    ref = jax.block_until_ready(jax.jit(downconv_reference)(x, params))
    if not np.allclose(np.asarray(out), np.asarray(ref), rtol=5e-2, atol=5e-2):
        raise AssertionError(
            "Pallas DownConv mismatch vs reference, max abs diff = "
            f"{float(np.max(np.abs(np.asarray(out) - np.asarray(ref))))}")

    print("KERNEL_OK")
</pallas_src>

<mosaic_0001>
module attributes {stable_mosaic.version = 11 : i64} {
  func.func @_downconv_kernel(%arg0: i32, %arg1: memref<10x10x16xf32, #tpu.memory_space<vmem>>, %arg2: memref<36x32xbf16, #tpu.memory_space<vmem>>, %arg3: memref<1x32xf32, #tpu.memory_space<vmem>>, %arg4: memref<288x32xbf16, #tpu.memory_space<vmem>>, %arg5: memref<1x32xf32, #tpu.memory_space<vmem>>, %arg6: memref<8x8x32xf32, #tpu.memory_space<vmem>>) attributes {dimension_semantics = [#tpu.dimension_semantics<parallel>], iteration_bounds = array<i64: 2>, scalar_prefetch = 0 : i64, scratch_operands = 0 : i64, tpu.core_type = #tpu.core_type<tc>, window_params = [{transform_indices = @transform_0, window_bounds = array<i64: 10, 10, 16>}, {pipeline_mode = #tpu.pipeline_mode<synchronous>, transform_indices = @transform_1, window_bounds = array<i64: 36, 32>}, {pipeline_mode = #tpu.pipeline_mode<synchronous>, transform_indices = @transform_2, window_bounds = array<i64: 1, 32>}, {pipeline_mode = #tpu.pipeline_mode<synchronous>, transform_indices = @transform_3, window_bounds = array<i64: 288, 32>}, {pipeline_mode = #tpu.pipeline_mode<synchronous>, transform_indices = @transform_4, window_bounds = array<i64: 1, 32>}, {transform_indices = @transform_5, window_bounds = array<i64: 8, 8, 32>}]} {
    %c0 = arith.constant 0 : index
    %c0_0 = arith.constant 0 : index
    %c0_1 = arith.constant 0 : index
    %0 = vector.load %arg1[%c0, %c0_0, %c0_1] : memref<10x10x16xf32, #tpu.memory_space<vmem>>, vector<10x10x16xf32>
    %1 = vector.shape_cast %0 : vector<10x10x16xf32> to vector<1x10x10x16xf32>
    %2 = vector.extract_strided_slice %1 {offsets = [0, 0, 0, 0], sizes = [1, 10, 10, 4], strides = [1, 1, 1, 1]} : vector<1x10x10x16xf32> to vector<1x10x10x4xf32>
    %3 = vector.extract_strided_slice %1 {offsets = [0, 0, 0, 4], sizes = [1, 10, 10, 4], strides = [1, 1, 1, 1]} : vector<1x10x10x16xf32> to vector<1x10x10x4xf32>
    %4 = arith.maximumf %2, %3 : vector<1x10x10x4xf32>
    %5 = vector.extract_strided_slice %1 {offsets = [0, 0, 0, 8], sizes = [1, 10, 10, 4], strides = [1, 1, 1, 1]} : vector<1x10x10x16xf32> to vector<1x10x10x4xf32>
    %6 = vector.extract_strided_slice %1 {offsets = [0, 0, 0, 12], sizes = [1, 10, 10, 4], strides = [1, 1, 1, 1]} : vector<1x10x10x16xf32> to vector<1x10x10x4xf32>
    %7 = arith.maximumf %5, %6 : vector<1x10x10x4xf32>
    %8 = arith.maximumf %4, %7 : vector<1x10x10x4xf32>
    %9 = vector.extract_strided_slice %8 {offsets = [0, 0, 0, 0], sizes = [1, 8, 8, 4], strides = [1, 1, 1, 1]} : vector<1x10x10x4xf32> to vector<1x8x8x4xf32>
    %10 = vector.extract_strided_slice %8 {offsets = [0, 0, 1, 0], sizes = [1, 8, 8, 4], strides = [1, 1, 1, 1]} : vector<1x10x10x4xf32> to vector<1x8x8x4xf32>
    %11 = vector.extract_strided_slice %8 {offsets = [0, 0, 2, 0], sizes = [1, 8, 8, 4], strides = [1, 1, 1, 1]} : vector<1x10x10x4xf32> to vector<1x8x8x4xf32>
    %12 = vector.extract_strided_slice %8 {offsets = [0, 1, 0, 0], sizes = [1, 8, 8, 4], strides = [1, 1, 1, 1]} : vector<1x10x10x4xf32> to vector<1x8x8x4xf32>
    %13 = vector.extract_strided_slice %8 {offsets = [0, 1, 1, 0], sizes = [1, 8, 8, 4], strides = [1, 1, 1, 1]} : vector<1x10x10x4xf32> to vector<1x8x8x4xf32>
    %14 = vector.extract_strided_slice %8 {offsets = [0, 1, 2, 0], sizes = [1, 8, 8, 4], strides = [1, 1, 1, 1]} : vector<1x10x10x4xf32> to vector<1x8x8x4xf32>
    %15 = vector.extract_strided_slice %8 {offsets = [0, 2, 0, 0], sizes = [1, 8, 8, 4], strides = [1, 1, 1, 1]} : vector<1x10x10x4xf32> to vector<1x8x8x4xf32>
    %16 = vector.extract_strided_slice %8 {offsets = [0, 2, 1, 0], sizes = [1, 8, 8, 4], strides = [1, 1, 1, 1]} : vector<1x10x10x4xf32> to vector<1x8x8x4xf32>
    %17 = vector.extract_strided_slice %8 {offsets = [0, 2, 2, 0], sizes = [1, 8, 8, 4], strides = [1, 1, 1, 1]} : vector<1x10x10x4xf32> to vector<1x8x8x4xf32>
    %18 = tpu.concatenate %9, %10, %11, %12, %13, %14, %15, %16, %17 in 3 : vector<1x8x8x4xf32>, vector<1x8x8x4xf32>, vector<1x8x8x4xf32>, vector<1x8x8x4xf32>, vector<1x8x8x4xf32>, vector<1x8x8x4xf32>, vector<1x8x8x4xf32>, vector<1x8x8x4xf32>, vector<1x8x8x4xf32> -> vector<1x8x8x36xf32>
    %19 = vector.shape_cast %18 : vector<1x8x8x36xf32> to vector<64x36xf32>
    %20 = arith.truncf %19 : vector<64x36xf32> to vector<64x36xbf16>
    %c0_2 = arith.constant 0 : index
    %c0_3 = arith.constant 0 : index
    %21 = vector.load %arg2[%c0_2, %c0_3] : memref<36x32xbf16, #tpu.memory_space<vmem>>, vector<36x32xbf16>
    %cst = arith.constant dense<0.000000e+00> : vector<64x32xf32>
    %22 = tpu.matmul %20, %21, %cst {dimension_numbers = #tpu.dot_dimension_numbers<[1], [0], [0], [1], [0, 0, 1, 1], [], []>} : vector<64x36xbf16>, vector<36x32xbf16>, vector<64x32xf32> -> vector<64x32xf32>
    %c0_4 = arith.constant 0 : index
    %c0_5 = arith.constant 0 : index
    %23 = vector.load %arg3[%c0_4, %c0_5] : memref<1x32xf32, #tpu.memory_space<vmem>>, vector<1x32xf32>
    %24 = vector.broadcast %23 : vector<1x32xf32> to vector<64x32xf32>
    %25 = arith.addf %22, %24 : vector<64x32xf32>
    %cst_6 = arith.constant 0.000000e+00 : f32
    %26 = vector.broadcast %cst_6 : f32 to vector<64x32xf32>
    %27 = arith.maximumf %25, %26 : vector<64x32xf32>
    %28 = vector.shape_cast %27 : vector<64x32xf32> to vector<1x8x8x32xf32>
    %cst_7 = arith.constant 0.000000e+00 : f32
    %29 = vector.broadcast %cst_7 : f32 to vector<1x1x8x32xf32>
    %30 = tpu.concatenate %29, %28, %29 in 1 : vector<1x1x8x32xf32>, vector<1x8x8x32xf32>, vector<1x1x8x32xf32> -> vector<1x10x8x32xf32>
    %cst_8 = arith.constant 0.000000e+00 : f32
    %31 = vector.broadcast %cst_8 : f32 to vector<1x10x1x32xf32>
    %32 = tpu.concatenate %31, %30, %31 in 2 : vector<1x10x1x32xf32>, vector<1x10x8x32xf32>, vector<1x10x1x32xf32> -> vector<1x10x10x32xf32>
    %33 = vector.extract_strided_slice %32 {offsets = [0, 0, 0, 0], sizes = [1, 8, 8, 32], strides = [1, 1, 1, 1]} : vector<1x10x10x32xf32> to vector<1x8x8x32xf32>
    %34 = vector.extract_strided_slice %32 {offsets = [0, 0, 1, 0], sizes = [1, 8, 8, 32], strides = [1, 1, 1, 1]} : vector<1x10x10x32xf32> to vector<1x8x8x32xf32>
    %35 = vector.extract_strided_slice %32 {offsets = [0, 0, 2, 0], sizes = [1, 8, 8, 32], strides = [1, 1, 1, 1]} : vector<1x10x10x32xf32> to vector<1x8x8x32xf32>
    %36 = vector.extract_strided_slice %32 {offsets = [0, 1, 0, 0], sizes = [1, 8, 8, 32], strides = [1, 1, 1, 1]} : vector<1x10x10x32xf32> to vector<1x8x8x32xf32>
    %37 = vector.extract_strided_slice %32 {offsets = [0, 1, 1, 0], sizes = [1, 8, 8, 32], strides = [1, 1, 1, 1]} : vector<1x10x10x32xf32> to vector<1x8x8x32xf32>
    %38 = vector.extract_strided_slice %32 {offsets = [0, 1, 2, 0], sizes = [1, 8, 8, 32], strides = [1, 1, 1, 1]} : vector<1x10x10x32xf32> to vector<1x8x8x32xf32>
    %39 = vector.extract_strided_slice %32 {offsets = [0, 2, 0, 0], sizes = [1, 8, 8, 32], strides = [1, 1, 1, 1]} : vector<1x10x10x32xf32> to vector<1x8x8x32xf32>
    %40 = vector.extract_strided_slice %32 {offsets = [0, 2, 1, 0], sizes = [1, 8, 8, 32], strides = [1, 1, 1, 1]} : vector<1x10x10x32xf32> to vector<1x8x8x32xf32>
    %41 = vector.extract_strided_slice %32 {offsets = [0, 2, 2, 0], sizes = [1, 8, 8, 32], strides = [1, 1, 1, 1]} : vector<1x10x10x32xf32> to vector<1x8x8x32xf32>
    %42 = tpu.concatenate %33, %34, %35, %36, %37, %38, %39, %40, %41 in 3 : vector<1x8x8x32xf32>, vector<1x8x8x32xf32>, vector<1x8x8x32xf32>, vector<1x8x8x32xf32>, vector<1x8x8x32xf32>, vector<1x8x8x32xf32>, vector<1x8x8x32xf32>, vector<1x8x8x32xf32>, vector<1x8x8x32xf32> -> vector<1x8x8x288xf32>
    %43 = vector.shape_cast %42 : vector<1x8x8x288xf32> to vector<64x288xf32>
    %44 = arith.truncf %43 : vector<64x288xf32> to vector<64x288xbf16>
    %c0_9 = arith.constant 0 : index
    %c0_10 = arith.constant 0 : index
    %45 = vector.load %arg4[%c0_9, %c0_10] : memref<288x32xbf16, #tpu.memory_space<vmem>>, vector<288x32xbf16>
    %cst_11 = arith.constant dense<0.000000e+00> : vector<64x32xf32>
    %46 = tpu.matmul %44, %45, %cst_11 {dimension_numbers = #tpu.dot_dimension_numbers<[1], [0], [0], [1], [0, 0, 1, 1], [], []>} : vector<64x288xbf16>, vector<288x32xbf16>, vector<64x32xf32> -> vector<64x32xf32>
    %c0_12 = arith.constant 0 : index
    %c0_13 = arith.constant 0 : index
    %47 = vector.load %arg5[%c0_12, %c0_13] : memref<1x32xf32, #tpu.memory_space<vmem>>, vector<1x32xf32>
    %48 = vector.broadcast %47 : vector<1x32xf32> to vector<64x32xf32>
    %49 = arith.addf %46, %48 : vector<64x32xf32>
    %cst_14 = arith.constant 0.000000e+00 : f32
    %50 = vector.broadcast %cst_14 : f32 to vector<64x32xf32>
    %51 = arith.maximumf %49, %50 : vector<64x32xf32>
    %52 = vector.shape_cast %51 : vector<64x32xf32> to vector<8x8x32xf32>
    %c0_15 = arith.constant 0 : index
    %c0_16 = arith.constant 0 : index
    %c0_17 = arith.constant 0 : index
    %53 = vector.load %arg6[%c0_15, %c0_16, %c0_17] : memref<8x8x32xf32, #tpu.memory_space<vmem>>, vector<8x8x32xf32>
    tpu.vector_store %arg6[%c0_15, %c0_16, %c0_17], %52 {strides = array<i32>} : memref<8x8x32xf32, #tpu.memory_space<vmem>>, vector<8x8x32xf32>,
    return
  }
  func.func @transform_0(%arg0: i32) -> (i32, i32, i32) {
    %c0_i32 = arith.constant 0 : i32
    %c0_i32_0 = arith.constant 0 : i32
    %c0_i32_1 = arith.constant 0 : i32
    return %arg0, %c0_i32, %c0_i32_0 : i32, i32, i32
  }
  func.func @transform_1(%arg0: i32) -> (i32, i32) {
    %c0_i32 = arith.constant 0 : i32
    %c0_i32_0 = arith.constant 0 : i32
    %c0_i32_1 = arith.constant 0 : i32
    return %c0_i32, %c0_i32_0 : i32, i32
  }
  func.func @transform_2(%arg0: i32) -> (i32, i32) {
    %c0_i32 = arith.constant 0 : i32
    %c0_i32_0 = arith.constant 0 : i32
    %c0_i32_1 = arith.constant 0 : i32
    return %c0_i32, %c0_i32_0 : i32, i32
  }
  func.func @transform_3(%arg0: i32) -> (i32, i32) {
    %c0_i32 = arith.constant 0 : i32
    %c0_i32_0 = arith.constant 0 : i32
    %c0_i32_1 = arith.constant 0 : i32
    return %c0_i32, %c0_i32_0 : i32, i32
  }
  func.func @transform_4(%arg0: i32) -> (i32, i32) {
    %c0_i32 = arith.constant 0 : i32
    %c0_i32_0 = arith.constant 0 : i32
    %c0_i32_1 = arith.constant 0 : i32
    return %c0_i32, %c0_i32_0 : i32, i32
  }
  func.func @transform_5(%arg0: i32) -> (i32, i32, i32) {
    %c0_i32 = arith.constant 0 : i32
    %c0_i32_0 = arith.constant 0 : i32
    %c0_i32_1 = arith.constant 0 : i32
    return %arg0, %c0_i32, %c0_i32_0 : i32, i32, i32
  }
}

</mosaic_0001>

<bundles_post_ra>
// kernel: downconv_forward.1
= control target key start
LH: loop header
LB: loop body
LE: loop exit
PB: predicated region body
PF: predicated region fallthrough
CT: control target
= control target key end

     0   :  { %10 = vsyncpa [#allocation3], 0  ;;  %s2958_s0 = inlined_call_operand.vmem [shape: f32[20,10,16], index: 0, kind: input, shape index: {}]   ;;  %s2959_s1 = inlined_call_operand.vmem [shape: bf16[36,32], index: 1, kind: input, shape index: {}]   ;;  %s2960_s2 = inlined_call_operand.vmem [shape: f32[1,32], index: 2, kind: input, shape index: {}]   ;;  %s2961_s3 = inlined_call_operand.vmem [shape: bf16[288,32], index: 3, kind: input, shape index: {}]   ;;  %s2962_s4 = inlined_call_operand.vmem [shape: f32[1,32], index: 4, kind: input, shape index: {}]   ;;  %s2963_s5 = inlined_call_operand.hbm [shape: f32[16,8,32], index: 5, kind: output, shape index: {}]  }
   0x1   :  { %12 = vsyncpa [#allocation3 + $0x1], 0  ;;  %s2224_s18 = smov 0   ;;  %s2226_s19 = smov 0  }
   0x2   :  { %s2228_s20 = smov 0   ;;  %s2230_s21 = smov 0  }
   0x3 LB: > { %s2245_s22 = sadd.s32 4294967295, %s2178_s21   ;;  %s1559_s23 = sadd.s32 4294967294, %s2178_s21   ;;  %s2178_s21 = sphi %s2230_s21, %s2969_s21   ;;  %s2174_s20 = sphi %s2228_s20, %s2968_s20   ;;  %s2170_s19 = sphi %s2226_s19, %s2967_s19   ;;  %s2166_s18 = sphi %s2224_s18, %s2966_s18  }
   0x4   : > { %s2249_s24 = sadd.s32 1, %s2178_s21   ;;  %s135_s25 = sadd.s32 1, %s2174_s20 }
   0x5   : > { %s132_s26 = ssub.s32 %s2178_s21, %s2249_s24  ;;  %p145_p0 = scmp.ne.s32.totalorder %s2174_s20, %s2170_s19 }
   0x6   : > { %p133_p1 = scmp.eq.s32.totalorder %s132_s26, 0  ;;  %p146_p2 = scmp.eq.s32.totalorder %s2245_s22, 1 }
   0x7   : > { %p151_p3 = scmp.ne.s32.totalorder %s2170_s19, %s2166_s18  ;;  %p152_p4 = scmp.eq.s32.totalorder %s1559_s23, 1 }
   0x8   : > { %s2260_s27 = scalar_select %p133_p1, %s2174_s20, %s135_s25  }
   0x9   : > { %p2262_p5 = por %p146_p2, %p145_p0  ;;  %p2266_p6 = por %p152_p4, %p151_p3 }
   0xa   : > { %p1562_p7 = scmp.ge.s32.totalorder %s2178_s21, 1  ;;  %p192_p8 = scmp.lt.s32.totalorder %s2178_s21, 3 }
   0xc   : > { %p193_p9 = pnand %p1562_p7, %p192_p8 }
   0xd   : > { %s221_s30 = smul.u32 (!%p193_p9), 10, %s2245_s22  ;;  %s2180_s10 = smov (!%p193_p9), 124  }
   0xe   : > { %196 = sbr.rel (%p193_p9) target bundleno = 901 (0x385), region = 40  ;;  %s2181_s11 = smov (!%p193_p9), 120  }
   0xf   : > { %p222_p10 = scmp.lt.s32.totalorder (!%p193_p9), %s221_s30, 19  ;;  %s2182_s12 = smov (!%p193_p9), 12  }
  0x10   : > { %s2183_s13 = smov (!%p193_p9), 8   ;;  %s2184_s14 = smov (!%p193_p9), 4  }
  0x11   : > { %s2185_s15 = smov (!%p193_p9), 24   ;;  %s2186_s16 = smov (!%p193_p9), 20  }
  0x12   : > { %s2187_s17 = smov (!%p193_p9), 16   ;;  %s2188_s23 = smov (!%p193_p9), 28  }
  0x13   : > { %s2971_s30 = smov (!%p222_p10, %s221_s30), 19  ;;  %vm515_vm0 = vcmask 1045504   ;;  %vm466_vm1 = vcmask 1046528   ;;  %s2189_s25 = smov 32   ;;  %vm837_vm2 = vcmask 1041408   ;;  %vm724_vm3 = vcmask 31744  }
  0x14   : > { %s1659_s6 = sshll.u32 %s2971_s30, 4  ;;  %vm733_vm4 = vcmask 64512   ;;  %vm742_vm5 = vcmask 97280   ;;  %vm751_vm6 = vcmask 130048   ;;  %vm760_vm7 = vcmask 162816   ;;  %s218_s8 = sand.u32 1, %s2170_s19  }
  0x15   : > { %s2276_s9 = scalar_lea.vmem %s2958_s0, %s1659_s6  ;;  %vm769_vm8 = vcmask 195584   ;;  %vm778_vm9 = vcmask 228352   ;;  %vm787_vm10 = vcmask 261120   ;;  %vm824_vm11 = vcmask 293888   ;;  %s2136_s6 = scalar_lea.hbm %s2963_s5, 128 }
  0x16   : > { %v234_v0 = vld [vmem:[%s2276_s9 + $0x20] sm:$0xff]  ;;  %v235_v1 = vld [vmem:[%s2276_s9 + $0x28] sm:$0x3]  ;;  %v236_v6 = vld [vmem:[%s2276_s9 + $0x30] sm:$0xff]  ;;  %vm905_vm12 = vcmask 1040384   ;;  %vm1164_vm13 = vcmask 523264  }
  0x17   : > { %v230_v2 = vld [vmem:[%s2276_s9] sm:$0xff]  ;;  %v1744_v3 = vpack.i.bf16 %v235_v1, %v234_v0  ;;  %v231_v4 = vld [vmem:[%s2276_s9 + $0x8] sm:$0x3]  ;;  %v237_v7 = vld [vmem:[%s2276_s9 + $0x38] sm:$0x3]  ;;  %vm1173_vm14 = vcmask 785408  }
  0x18   : > { %v1734_v5 = vpack.i.bf16 %v231_v4, %v230_v2  ;;  %v232_v8 = vld [vmem:[%s2276_s9 + $0x10] sm:$0xff]  ;;  %v233_v9 = vld [vmem:[%s2276_s9 + $0x18] sm:$0x3]  ;;  %v2289_v10 = vld [vmem:[%s2276_s9 + $0x40] sm:$0xff]  ;;  %v1749_v13 = vpack.i.bf16 %v237_v7, %v236_v6 }
  0x19   : > { %1745 = vrot.lane.b32.xlu1 %v1744_v3, %s2180_s10  ;;  %v2292_v11 = vld [vmem:[%s2276_s9 + $0x48] sm:$0x3]  ;;  %v1739_v14 = vpack.i.bf16 %v233_v9, %v232_v8  ;;  %v240_v15 = vld [vmem:[%s2276_s9 + $0x50] sm:$0xff]  ;;  %v241_v16 = vld [vmem:[%s2276_s9 + $0x58] sm:$0x3] }
  0x1a   : > { %1735 = vrot.lane.b32.xlu0 %v1734_v5, %s2180_s10  ;;  %v1754_v12 = vpack.i.bf16 %v2292_v11, %v2289_v10  ;;  %v2302_v17 = vld [vmem:[%s2276_s9 + $0x70] sm:$0xff]  ;;  %v2305_v18 = vld [vmem:[%s2276_s9 + $0x78] sm:$0x3]  ;;  %v1759_v19 = vpack.i.bf16 %v241_v16, %v240_v15  ;;  %v242_v20 = vld [vmem:[%s2276_s9 + $0x60] sm:$0xff] }
  0x1b   : > { %v243_v21 = vld [vmem:[%s2276_s9 + $0x68] sm:$0x3]  ;;  %v1769_v22 = vpack.i.bf16 %v2305_v18, %v2302_v17  ;;  %v2315_v24 = vld [vmem:[%s2276_s9 + $0x90] sm:$0xff]  ;;  %v2318_v25 = vld [vmem:[%s2276_s9 + $0x98] sm:$0x3] }
  0x1c   : > { %1755 = vrot.lane.b32.xlu2 %v1754_v12, %s2180_s10  ;;  %v1764_v23 = vpack.i.bf16 %v243_v21, %v242_v20  ;;  %v2321_v26 = vld [vmem:[%s2276_s9 + $0x80] sm:$0xff]  ;;  %v2324_v27 = vld [vmem:[%s2276_s9 + $0x88] sm:$0x3]  ;;  %v1779_v28 = vpack.i.bf16 %v2318_v25, %v2315_v24  ;;  %s1563_s9 = sshll.u32 %s218_s8, 6 }
  0x1d   : > { %v1774_v29 = vpack.i.bf16 %v2324_v27, %v2321_v26 }
  0x21   : > { %1750 = vrot.lane.b32.xlu1 %v1749_v13, %s2180_s10 }
  0x22   : > { %1740 = vrot.lane.b32.xlu0 %v1739_v14, %s2180_s10 }
  0x24   : > { %1760 = vrot.lane.b32.xlu2 %v1759_v19, %s2180_s10 }
  0x29   : > { %1770 = vrot.lane.b32.xlu1 %v1769_v22, %s2180_s10 }
  0x2a   : > { %1765 = vrot.lane.b32.xlu0 %v1764_v23, %s2180_s10 }
  0x31   : > { %1780 = vrot.lane.b32.xlu1 %v1779_v28, %s2180_s10 }
  0x32   : > { %1775 = vrot.lane.b32.xlu0 %v1774_v29, %s2180_s10  ;;  %s1680_s10 = sshll.u32 %s2245_s22, 6  ;;  %s1482_s22 = scalar_lea.sflag [#allocation3], %s218_s8 }
  0x76   : > { %v1756_v30 = vpop.permute.xlu2 %1755 }
  0x77   : > { %v1758_v56 = vunpack.i.h.bf16 %v1756_v30  ;;  %v1757_v57 = vunpack.i.l.bf16 %v1756_v30 }
  0x79   : > { %v2362_v63 = vmax.f32 %v2292_v11, %v1758_v56 }
  0x7e   : > { %v1761_v47 = vpop.permute.xlu2 %1760 }
  0x7f   : > { %v1763_v54 = vunpack.i.h.bf16 %v1761_v47  ;;  %v1762_v55 = vunpack.i.l.bf16 %v1761_v47 }
  0x81   : > { %v2357_v60 = vmax.f32 %v241_v16, %v1763_v54  ;;  %v2359_v61 = vmax.f32 %v240_v15, %v1762_v55 }
  0x8b   : > { %v1746_v31 = vpop.permute.xlu1 %1745 }
  0x8c   : > { %v1748_v32 = vunpack.i.h.bf16 %v1746_v31  ;;  %v1747_v33 = vunpack.i.l.bf16 %v1746_v31  ;;  %v1736_v34 = vpop.permute.xlu0 %1735 }
  0x8d   : > { %v1738_v35 = vunpack.i.h.bf16 %v1736_v34  ;;  %v1737_v36 = vunpack.i.l.bf16 %v1736_v34 }
  0x8e   : > { %v2332_v37 = vmax.f32 %v235_v1, %v1748_v32  ;;  %v2334_v38 = vmax.f32 %v234_v0, %v1747_v33  ;;  %v338_v0 = vmax.f32 %v2289_v10, %v1757_v57 }
  0x8f   : > { %v2336_v39 = vmax.f32 %v231_v4, %v1738_v35  ;;  %v2338_v40 = vmax.f32 %v230_v2, %v1737_v36 }
  0x90   : > { %v1794_v41 = vpack.i.bf16 %v2332_v37, %v2334_v38 }
  0x91   : > { %v1784_v42 = vpack.i.bf16 %v2336_v39, %v2338_v40 }
  0x92   : > { %1795 = vrot.lane.b32.xlu1 %v1794_v41, %s2181_s11 }
  0x93   : > { %1785 = vrot.lane.b32.xlu2 %v1784_v42, %s2181_s11  ;;  %v1751_v43 = vpop.permute.xlu1 %1750 }
  0x94   : > { %v1753_v44 = vunpack.i.h.bf16 %v1751_v43  ;;  %v1752_v45 = vunpack.i.l.bf16 %v1751_v43  ;;  %v1741_v46 = vpop.permute.xlu0 %1740 }
  0x95   : > { %v1743_v48 = vunpack.i.h.bf16 %v1741_v46  ;;  %v1742_v49 = vunpack.i.l.bf16 %v1741_v46 }
  0x96   : > { %v2346_v50 = vmax.f32 %v237_v7, %v1753_v44  ;;  %v336_v51 = vmax.f32 %v236_v6, %v1752_v45  ;;  %v1809_v6 = vpack.i.bf16 %v2357_v60, %v2359_v61 }
  0x97   : > { %v2348_v52 = vmax.f32 %v233_v9, %v1743_v48  ;;  %v2350_v53 = vmax.f32 %v232_v8, %v1742_v49  ;;  %v1804_v9 = vpack.i.bf16 %v2362_v63, %v338_v0 }
  0x98   : > { %v1799_v58 = vpack.i.bf16 %v2346_v50, %v336_v51 }
  0x99   : > { %v1789_v59 = vpack.i.bf16 %v2348_v52, %v2350_v53 }
  0x9b   : > { %1790 = vrot.lane.b32.xlu0 %v1789_v59, %s2181_s11  ;;  %1800 = vrot.lane.b32.xlu2 %v1799_v58, %s2181_s11  ;;  %v1771_v62 = vpop.permute.xlu1 %1770 }
  0x9c   : > { %v1766_v1 = vpop.permute.xlu0 %1765  ;;  %v1773_v7 = vunpack.i.h.bf16 %v1771_v62  ;;  %v1772_v8 = vunpack.i.l.bf16 %v1771_v62 }
  0x9d   : > { %v1768_v2 = vunpack.i.h.bf16 %v1766_v1  ;;  %v1767_v3 = vunpack.i.l.bf16 %v1766_v1 }
  0x9e   : > { %v2377_v12 = vmax.f32 %v2305_v18, %v1773_v7  ;;  %v2380_v13 = vmax.f32 %v2302_v17, %v1772_v8 }
  0x9f   : > { %v2365_v4 = vmax.f32 %v243_v21, %v1768_v2  ;;  %v2367_v5 = vmax.f32 %v242_v20, %v1767_v3 }
  0xa0   : > { %v1819_v28 = vpack.i.bf16 %v2377_v12, %v2380_v13 }
  0xa1   : > { %v1814_v11 = vpack.i.bf16 %v2365_v4, %v2367_v5 }
  0xa3   : > { %1815 = vrot.lane.b32.xlu1 %v1814_v11, %s2181_s11  ;;  %1810 = vrot.lane.b32.xlu0 %v1809_v6, %s2181_s11  ;;  %v1781_v10 = vpop.permute.xlu1 %1780 }
  0xa4   : > { %1805 = vrot.lane.b32.xlu2 %v1804_v9, %s2181_s11  ;;  %v1783_v14 = vunpack.i.h.bf16 %v1781_v10  ;;  %v1782_v15 = vunpack.i.l.bf16 %v1781_v10  ;;  %v1776_v16 = vpop.permute.xlu0 %1775 }
  0xa5   : > { %v1778_v19 = vunpack.i.h.bf16 %v1776_v16  ;;  %v1777_v20 = vunpack.i.l.bf16 %v1776_v16 }
  0xa6   : > { %v2384_v21 = vmax.f32 %v2318_v25, %v1783_v14  ;;  %v2387_v22 = vmax.f32 %v2315_v24, %v1782_v15 }
  0xa7   : > { %v2390_v23 = vmax.f32 %v2324_v27, %v1778_v19  ;;  %v2393_v18 = vmax.f32 %v2321_v26, %v1777_v20 }
  0xa8   : > { %v1829_v17 = vpack.i.bf16 %v2384_v21, %v2387_v22 }
  0xa9   : > { %v1824_v29 = vpack.i.bf16 %v2390_v23, %v2393_v18 }
  0xab   : > { %1825 = vrot.lane.b32.xlu1 %v1824_v29, %s2181_s11  ;;  %1830 = vrot.lane.b32.xlu0 %v1829_v17, %s2181_s11 }
  0xac   : > { %1820 = vrot.lane.b32.xlu2 %v1819_v28, %s2181_s11 }
  0xed   : > { %v1786_v24 = vpop.permute.xlu2 %1785 }
  0xee   : > { %v1788_v34 = vunpack.i.h.bf16 %v1786_v24  ;;  %v1787_v35 = vunpack.i.l.bf16 %v1786_v24 }
  0xf0   : > { %v431_v41 = vmax.f32 %v2336_v39, %v1788_v34  ;;  %v2416_v42 = vmax.f32 %v2338_v40, %v1787_v35 }
  0xf2   : > { %v517_v47 = vrot.slane %v431_v41, 2  ;;  %v516_v48 = vrot.slane %v2416_v42, 2  ;;  %v468_v39 = vrot.slane %v431_v41, 1  ;;  %v467_v40 = vrot.slane %v2416_v42, 1 }
  0xf4   : > { %v469_v2 = vsel %vm466_vm1, %v467_v40, %v468_v39 }
  0xf5   : > { %v1801_v25 = vpop.permute.xlu2 %1800 }
  0xf6   : > { %v1802_v27 = vunpack.i.l.bf16 %v1801_v25  ;;  %v1803_v8 = vunpack.i.h.bf16 %v1801_v25 }
  0xf8   : > { %v2407_v31 = vmax.f32 %v336_v51, %v1802_v27  ;;  %v437_v19 = vmax.f32 %v2346_v50, %v1803_v8 }
  0xfa   : > { %v477_v27 = vrot.slane %v437_v19, 1  ;;  %v525_v35 = vrot.slane %v2407_v31, 2 }
  0xfe   : > { %v2404_v26 = vpop.permute.xlu2 %1805 }
  0xff   : > { %v1807_v30 = vunpack.i.l.bf16 %v2404_v26  ;;  %v1808_v28 = vunpack.i.h.bf16 %v2404_v26 }
 0x101   : > { %v2409_v32 = vmax.f32 %v338_v0, %v1807_v30  ;;  %v476_v30 = vrot.slane %v2407_v31, 1  ;;  %v439_v26 = vmax.f32 %v2362_v63, %v1808_v28 }
 0x103   : > { %v1844_v33 = vpack.i.bf16 %v2409_v32, %v2407_v31  ;;  %v529_v40 = vrot.slane %v439_v26, 2 }
 0x104   : > { %v1796_v36 = vpop.permute.xlu1 %1795 }
 0x105   : > { %1845 = vrot.lane.b32.xlu0 %v1844_v33, %s2182_s12  ;;  %v1797_v43 = vunpack.i.l.bf16 %v1796_v36  ;;  %v1798_v49 = vunpack.i.h.bf16 %v1796_v36  ;;  %v526_v33 = vrot.slane %v437_v19, 2  ;;  %v480_v36 = vrot.slane %v439_v26, 1 }
 0x107   : > { %v2420_v51 = vmax.f32 %v2334_v38, %v1797_v43  ;;  %v435_v62 = vmax.f32 %v2332_v37, %v1798_v49  ;;  %v479_v43 = vrot.slane %v2409_v32, 1  ;;  %v527_v63 = vsel %vm515_vm0, %v525_v35, %v526_v33 }
 0x109   : > { %v523_v9 = vrot.slane %v435_v62, 2  ;;  %v522_v37 = vrot.slane %v2420_v51, 2  ;;  %v474_v11 = vrot.slane %v435_v62, 1  ;;  %v1839_v15 = vpack.i.bf16 %v2407_v31, %v2420_v51  ;;  %v1821_v62 = vpop.permute.xlu2 %1820 }
 0x10a   : > { %v473_v16 = vrot.slane %v2420_v51, 1 }
 0x10b   : > { %v524_v20 = vsel %vm515_vm0, %v522_v37, %v523_v9 }
 0x10c   : > { %v475_v25 = vsel %vm466_vm1, %v473_v16, %v474_v11 }
 0x10d   : > { %v1791_v44 = vpop.permute.xlu0 %1790 }
 0x10e   : > { %v1793_v45 = vunpack.i.h.bf16 %v1791_v44  ;;  %v1792_v46 = vunpack.i.l.bf16 %v1791_v44 }
 0x110   : > { %v433_v54 = vmax.f32 %v2348_v52, %v1793_v45  ;;  %v2424_v55 = vmax.f32 %v2350_v53, %v1792_v46  ;;  %v518_v52 = vsel %vm515_vm0, %v516_v48, %v517_v47  ;;  %v1884_v45 = vpack.i.bf16 %v527_v63, %v524_v20 }
 0x111   : > { %v481_v46 = vsel %vm466_vm1, %v479_v43, %v480_v36 }
 0x112   : > { %v471_v56 = vrot.slane %v433_v54, 1  ;;  %v520_v57 = vrot.slane %v433_v54, 2  ;;  %v1834_v58 = vpack.i.bf16 %v2420_v51, %v2424_v55  ;;  %v519_v59 = vrot.slane %v2424_v55, 2 }
 0x113   : > { %v470_v38 = vrot.slane %v2424_v55, 1 }
 0x114   : > { %1835 = vrot.lane.b32.xlu2 %v1834_v58, %s2182_s12  ;;  %v521_v53 = vsel %vm515_vm0, %v519_v59, %v520_v57 }
 0x115   : > { %v1854_v0 = vpack.i.bf16 %v521_v53, %v518_v52  ;;  %v472_v1 = vsel %vm466_vm1, %v470_v38, %v471_v56  ;;  %v1816_v3 = vpop.permute.xlu1 %1815  ;;  %v1811_v6 = vpop.permute.xlu0 %1810  ;;  %v1864_v17 = vpack.i.bf16 %v524_v20, %v521_v53  ;;  %v528_v56 = vrot.slane %v2409_v32, 2 }
 0x116   : > { %v1849_v7 = vpack.i.bf16 %v472_v1, %v469_v2  ;;  %v1817_v10 = vunpack.i.l.bf16 %v1816_v3  ;;  %v1812_v14 = vunpack.i.l.bf16 %v1811_v6  ;;  %v1859_v50 = vpack.i.bf16 %v475_v25, %v472_v1 }
 0x117   : > { %1855 = vrot.lane.b32.xlu1 %v1854_v0, %s2183_s13  ;;  %v1813_v41 = vunpack.i.h.bf16 %v1811_v6  ;;  %v1818_v39 = vunpack.i.h.bf16 %v1816_v3  ;;  %v530_v52 = vsel %vm515_vm0, %v528_v56, %v529_v40  ;;  %v1823_v1 = vunpack.i.h.bf16 %v1821_v62 }
 0x118   : > { %1850 = vrot.lane.b32.xlu0 %v1849_v7, %s2184_s14  ;;  %v2448_v29 = vmax.f32 %v2367_v5, %v1817_v10  ;;  %v2451_v24 = vmax.f32 %v2359_v61, %v1812_v14  ;;  %v478_v61 = vsel %vm466_vm1, %v476_v30, %v477_v27  ;;  %v1822_v2 = vunpack.i.l.bf16 %v1821_v62 }
 0x119   : > { %v1889_v34 = vpack.i.bf16 %v478_v61, %v475_v25  ;;  %v441_v44 = vmax.f32 %v2357_v60, %v1813_v41  ;;  %v1899_v47 = vpack.i.bf16 %v481_v46, %v478_v61  ;;  %v443_v57 = vmax.f32 %v2365_v4, %v1818_v39 }
 0x11a   : > { %v1879_v5 = vpack.i.bf16 %v2448_v29, %v2451_v24  ;;  %v482_v49 = vrot.slane %v2451_v24, 1  ;;  %v1874_v54 = vpack.i.bf16 %v2451_v24, %v2409_v32  ;;  %v531_v38 = vrot.slane %v2451_v24, 2 }
 0x11b   : > { %v483_v48 = vrot.slane %v441_v44, 1  ;;  %v532_v59 = vrot.slane %v441_v44, 2  ;;  %v486_v53 = vrot.slane %v443_v57, 1  ;;  %v485_v0 = vrot.slane %v2448_v29, 1 }
 0x11c   : > { %1840 = vrot.lane.b32.xlu2 %v1839_v15, %s2185_s15  ;;  %v1904_v3 = vpack.i.bf16 %v530_v52, %v527_v63  ;;  %v445_v8 = vmax.f32 %v2377_v12, %v1823_v1  ;;  %v2489_v9 = vmax.f32 %v2380_v13, %v1822_v2  ;;  %v535_v37 = vrot.slane %v443_v57, 2  ;;  %v1660_v2 = vld [vmem:[%s2959_s1] sm:$0xff] }
 0x11d   : > { %v484_v60 = vsel %vm466_vm1, %v482_v49, %v483_v48  ;;  %v533_v4 = vsel %vm515_vm0, %v531_v38, %v532_v59  ;;  %v487_v6 = vsel %vm466_vm1, %v485_v0, %v486_v53  ;;  %v534_v11 = vrot.slane %v2448_v29, 2  ;;  %v1826_v19 = vpop.permute.xlu1 %1825  ;;  %v1831_v61 = vpop.permute.xlu0 %1830  ;;  %v804_v38 = vld [vmem:[%s2959_s1 + $0x10] sm:$0x3]  ;;  %v1661_v0 = vld [vmem:[%s2959_s1 + $0x8] sm:$0xff] }
 0x11e   : > { %v1909_v58 = vpack.i.bf16 %v484_v60, %v481_v46  ;;  %v1929_v7 = vpack.i.bf16 %v533_v4, %v530_v52  ;;  %v1934_v10 = vpack.i.bf16 %v487_v6, %v484_v60  ;;  %v489_v14 = vrot.slane %v445_v8, 1 }
 0x11f   : > { %1865 = vrot.lane.b32.xlu1 %v1864_v17, %s2186_s16  ;;  %v536_v15 = vsel %vm515_vm0, %v534_v11, %v535_v37  ;;  %v488_v16 = vrot.slane %v2489_v9, 1  ;;  %v538_v17 = vrot.slane %v445_v8, 2  ;;  %v1828_v28 = vunpack.i.h.bf16 %v1826_v19 }
 0x120   : > { %1860 = vrot.lane.b32.xlu0 %v1859_v50, %s2187_s17  ;;  %v1939_v12 = vpack.i.bf16 %v536_v15, %v533_v4  ;;  %v1827_v25 = vunpack.i.l.bf16 %v1826_v19  ;;  %v537_v50 = vrot.slane %v2489_v9, 2  ;;  %v1919_v27 = vpack.i.bf16 %v2489_v9, %v2448_v29 }
 0x121   : > { %v490_v13 = vsel %vm466_vm1, %v488_v16, %v489_v14  ;;  %v447_v30 = vmax.f32 %v2390_v23, %v1828_v28  ;;  %v1833_v35 = vunpack.i.h.bf16 %v1831_v61  ;;  %v1832_v36 = vunpack.i.l.bf16 %v1831_v61 }
 0x122   : > { %v1944_v20 = vpack.i.bf16 %v490_v13, %v487_v6  ;;  %v446_v26 = vmax.f32 %v2393_v18, %v1827_v25  ;;  %v818_v62 = vunpack.c.l.b16 %v804_v38 }
 0x123   : > { %v591_v43 = vrot.slane %v447_v30, 1  ;;  %v449_v23 = vmax.f32 %v2384_v21, %v1833_v35  ;;  %v448_v18 = vmax.f32 %v2387_v22, %v1832_v36 }
 0x124   : > { %1880 = vrot.lane.b32.xlu2 %v1879_v5, %s2182_s12  ;;  %v539_v5 = vsel %vm515_vm0, %v537_v50, %v538_v17  ;;  %v617_v41 = vrot.slane %v446_v26, 2  ;;  %v590_v63 = vrot.slane %v446_v26, 1  ;;  %v821_v52 = vpack.c.b16 %v818_v62, %v818_v62 }
 0x125   : > { %v1949_v33 = vpack.i.bf16 %v539_v5, %v536_v15  ;;  %v698_v48 = vrot.slane %v449_v23, 2  ;;  %v697_v49 = vrot.slane %v448_v18, 2  ;;  %v671_v39 = vrot.slane %v449_v23, 1 }
 0x126   : > { %v670_v21 = vrot.slane %v448_v18, 1  ;;  %v1959_v60 = vpack.i.bf16 %v448_v18, %v446_v26  ;;  %v839_v53 = vsel %vm837_vm2, %v821_v52, 0 }
 0x127   : > { %1890 = vrot.lane.b32.xlu1 %v1889_v34, %s2184_s14  ;;  %v699_v22 = vsel %vm515_vm0, %v697_v49, %v698_v48  ;;  %846 = vmatpush.bf16.msra.mxu0 %v839_v53 }
 0x128   : > { %1870 = vrot.lane.b32.xlu0 %v1889_v34, %s2188_s23  ;;  %v618_v34 = vrot.slane %v447_v30, 2  ;;  %v672_v56 = vsel %vm466_vm1, %v670_v21, %v671_v39 }
 0x12a   : > { %v619_v44 = vsel %vm515_vm0, %v617_v41, %v618_v34 }
 0x12b   : > { %v1979_v46 = vpack.i.bf16 %v619_v44, %v539_v5  ;;  %v1989_v40 = vpack.i.bf16 %v699_v22, %v619_v44  ;;  %847 = vmatpush.bf16.msra.mxu0 %v1661_v0 }
 0x12c   : > { %1885 = vrot.lane.b32.xlu2 %v1884_v45, %s2189_s25 }
 0x12f   : > { %1900 = vrot.lane.b32.xlu1 %v1899_v47, %s2187_s17  ;;  %v592_v47 = vsel %vm466_vm1, %v590_v63, %v591_v43  ;;  %848 = vmatpush.bf16.msra.mxu0 %v1660_v2 }
 0x130   : > { %1875 = vrot.lane.b32.xlu0 %v1874_v54, %s2185_s15  ;;  %v1974_v54 = vpack.i.bf16 %v592_v47, %v490_v13  ;;  %v1984_v57 = vpack.i.bf16 %v672_v56, %v592_v47 }
 0x134   : > { %1895 = vrot.lane.b32.xlu2 %v1884_v45, %s2183_s13  ;;  %v1954_v45 = vpack.i.bf16 %v446_v26, %v2489_v9 }
 0x137   : > { %1910 = vrot.lane.b32.xlu1 %v1909_v58, %s2188_s23 }
 0x138   : > { %1925 = vrot.lane.b32.xlu0 %v1909_v58, %s2184_s14 }
 0x13c   : > { %1905 = vrot.lane.b32.xlu2 %v1904_v3, %s2186_s16 }
 0x13f   : > { %1930 = vrot.lane.b32.xlu1 %v1929_v7, %s2183_s13 }
 0x140   : > { %1935 = vrot.lane.b32.xlu0 %v1934_v10, %s2187_s17 }
 0x144   : > { %1915 = vrot.lane.b32.xlu2 %v1929_v7, %s2189_s25 }
 0x147   : > { %1940 = vrot.lane.b32.xlu1 %v1939_v12, %s2186_s16 }
 0x148   : > { %1945 = vrot.lane.b32.xlu0 %v1944_v20, %s2188_s23 }
 0x14c   : > { %1920 = vrot.lane.b32.xlu2 %v1919_v27, %s2185_s15 }
 0x14f   : > { %1950 = vrot.lane.b32.xlu1 %v1949_v33, %s2189_s25 }
 0x150   : > { %1970 = vrot.lane.b32.xlu0 %v1949_v33, %s2183_s13 }
 0x154   : > { %1965 = vrot.lane.b32.xlu2 %v1944_v20, %s2184_s14  ;;  %s1493_s14 = scalar_lea.hbm %s2963_s5, %s1680_s10 }
 0x157   : > { %1955 = vrot.lane.b32.xlu1 %v1954_v45, %s2182_s12 }
 0x158   : > { %1980 = vrot.lane.b32.xlu0 %v1979_v46, %s2186_s16  ;;  %s1496_s16 = sshll.u32 %s1493_s14, 4  ;;  %s1497_s16 = int_to_ptr.hbm [resolvable:$true] %s1496_s16 }
 0x15c   : > { %1975 = vrot.lane.b32.xlu2 %v1974_v54, %s2187_s17  ;;  %s2191_s17 = smov 64  }
 0x15f   : > { %1960 = vrot.lane.b32.xlu1 %v1959_v60, %s2185_s15 }
 0x160   : > { %1990 = vrot.lane.b32.xlu0 %v1989_v40, %s2189_s25 }
 0x164   : > { %1985 = vrot.lane.b32.xlu2 %v1984_v57, %s2188_s23  ;;  %s2192_s23 = smov 96  }
 0x16e   : > { %v1836_v58 = vpop.permute.xlu2 %1835 }
 0x16f   : > { %v1838_v19 = vunpack.i.h.bf16 %v1836_v58  ;;  %v1837_v17 = vunpack.i.l.bf16 %v1836_v58 }
 0x176   : > { %v1841_v59 = vpop.permute.xlu2 %1840 }
 0x177   : > { %v2534_v3 = vpop.permute.xlu0 %1845  ;;  %v1843_v41 = vunpack.i.h.bf16 %v1841_v59  ;;  %v1842_v43 = vunpack.i.l.bf16 %v1841_v59 }
 0x17e   : > { %v2529_v1 = vpop.permute.xlu2 %1880 }
 0x186   : > { %v1886_v6 = vpop.permute.xlu2 %1885 }
 0x187   : > { %v1888_v44 = vunpack.i.h.bf16 %v1886_v6  ;;  %v1887_v45 = vunpack.i.l.bf16 %v1886_v6 }
 0x189   : > { %v1856_v4 = vpop.permute.xlu1 %1855 }
 0x18a   : > { %v1851_v7 = vpop.permute.xlu0 %1850  ;;  %v1858_v11 = vunpack.i.h.bf16 %v1856_v4  ;;  %v1857_v10 = vunpack.i.l.bf16 %v1856_v4 }
 0x18b   : > { %v1853_v8 = vunpack.i.h.bf16 %v1851_v7  ;;  %v1852_v37 = vunpack.i.l.bf16 %v1851_v7 }
 0x18d   : > { %v726_v14 = vsel %vm724_vm3, %v2424_v55, %v1853_v8  ;;  %v725_v15 = vsel %vm724_vm3, %v2416_v42, %v1852_v37 }
 0x18e   : > { %v735_v12 = vsel %vm733_vm4, %v726_v14, %v1858_v11  ;;  %v734_v13 = vsel %vm733_vm4, %v725_v15, %v1857_v10  ;;  %v1896_v28 = vpop.permute.xlu2 %1895 }
 0x18f   : > { %v743_v55 = vsel %vm742_vm5, %v734_v13, %v1837_v17  ;;  %v744_v26 = vsel %vm742_vm5, %v735_v12, %v1838_v19  ;;  %v1898_v22 = vunpack.i.h.bf16 %v1896_v28  ;;  %v1897_v60 = vunpack.i.l.bf16 %v1896_v28 }
 0x191   : > { %v1866_v16 = vpop.permute.xlu1 %1865 }
 0x192   : > { %v1861_v20 = vpop.permute.xlu0 %1860  ;;  %v1868_v27 = vunpack.i.h.bf16 %v1866_v16  ;;  %v1867_v30 = vunpack.i.l.bf16 %v1866_v16 }
 0x193   : > { %v1863_v25 = vunpack.i.h.bf16 %v1861_v20  ;;  %v1862_v50 = vunpack.i.l.bf16 %v1861_v20 }
 0x195   : > { %v752_v42 = vsel %vm751_vm6, %v743_v55, %v1862_v50  ;;  %v753_v5 = vsel %vm751_vm6, %v744_v26, %v1863_v25 }
 0x196   : > { %v761_v33 = vsel %vm760_vm7, %v752_v42, %v1867_v30  ;;  %v762_v34 = vsel %vm760_vm7, %v753_v5, %v1868_v27  ;;  %v1906_v48 = vpop.permute.xlu2 %1905 }
 0x197   : > { %v770_v46 = vsel %vm769_vm8, %v761_v33, %v1842_v43  ;;  %v771_v47 = vsel %vm769_vm8, %v762_v34, %v1843_v41  ;;  %v1908_v7 = vunpack.i.h.bf16 %v1906_v48  ;;  %v1907_v8 = vunpack.i.l.bf16 %v1906_v48 }
 0x199   : > { %v1891_v61 = vpop.permute.xlu1 %1890 }
 0x19a   : > { %v1893_v35 = vunpack.i.h.bf16 %v1891_v61  ;;  %v1892_v36 = vunpack.i.l.bf16 %v1891_v61  ;;  %v1871_v63 = vpop.permute.xlu0 %1870 }
 0x19b   : > { %v1873_v23 = vunpack.i.h.bf16 %v1871_v63  ;;  %v1872_v18 = vunpack.i.l.bf16 %v1871_v63 }
 0x19c   : > { %v728_v49 = vsel %vm724_vm3, %v2407_v31, %v1893_v35  ;;  %v727_v54 = vsel %vm724_vm3, %v2420_v51, %v1892_v36  ;;  %v1848_v31 = vunpack.i.h.bf16 %v2534_v3  ;;  %v1847_v51 = vunpack.i.l.bf16 %v2534_v3 }
 0x19d   : > { %v779_v39 = vsel %vm778_vm9, %v770_v46, %v1872_v18  ;;  %v780_v21 = vsel %vm778_vm9, %v771_v47, %v1873_v23  ;;  %v737_v58 = vsel %vm733_vm4, %v728_v49, %v1898_v22  ;;  %v736_v59 = vsel %vm733_vm4, %v727_v54, %v1897_v60 }
 0x19e   : > { %v788_v40 = vsel %vm787_vm10, %v779_v39, %v1887_v45  ;;  %v789_v56 = vsel %vm787_vm10, %v780_v21, %v1888_v44  ;;  %v745_v0 = vsel %vm742_vm5, %v736_v59, %v1847_v51  ;;  %v746_v2 = vsel %vm742_vm5, %v737_v58, %v1848_v31  ;;  %v1916_v37 = vpop.permute.xlu2 %1915 }
 0x19f   : > { %v796_v57 = vpack.c.bf16 %v789_v56, %v788_v40  ;;  %v1918_v12 = vunpack.i.h.bf16 %v1916_v37  ;;  %v1917_v13 = vunpack.i.l.bf16 %v1916_v37  ;;  %v1883_v23 = vunpack.i.h.bf16 %v2529_v1 }
 0x1a0   : > { %v1882_v18 = vunpack.i.l.bf16 %v2529_v1 }
 0x1a1   : > { %v1901_v38 = vpop.permute.xlu1 %1900  ;;  %1574 = vmatmul.msk.bf16.vlgmr.msra.gmra.mxu0 %vm824_vm11, %v796_v57 }
 0x1a2   : > { %v1903_v62 = vunpack.i.h.bf16 %v1901_v38  ;;  %v1902_v52 = vunpack.i.l.bf16 %v1901_v38  ;;  %v1876_v53 = vpop.permute.xlu0 %1875 }
 0x1a3   : > { %v1878_v10 = vunpack.i.h.bf16 %v1876_v53  ;;  %v1877_v14 = vunpack.i.l.bf16 %v1876_v53 }
 0x1a4   : > { %v754_v4 = vsel %vm751_vm6, %v745_v0, %v1902_v52  ;;  %v755_v6 = vsel %vm751_vm6, %v746_v2, %v1903_v62 }
 0x1a5   : > { %v763_v11 = vsel %vm760_vm7, %v754_v4, %v1907_v8  ;;  %v764_v3 = vsel %vm760_vm7, %v755_v6, %v1908_v7 }
 0x1a6   : > { %v773_v20 = vsel %vm769_vm8, %v764_v3, %v1878_v10  ;;  %v772_v17 = vsel %vm769_vm8, %v763_v11, %v1877_v14  ;;  %v1921_v61 = vpop.permute.xlu2 %1920 }
 0x1a7   : > { %v1923_v1 = vunpack.i.h.bf16 %v1921_v61  ;;  %v1922_v40 = vunpack.i.l.bf16 %v1921_v61 }
 0x1a9   : > { %v1911_v15 = vpop.permute.xlu1 %1910 }
 0x1aa   : > { %v1913_v16 = vunpack.i.h.bf16 %v1911_v15  ;;  %v1912_v19 = vunpack.i.l.bf16 %v1911_v15  ;;  %v1926_v28 = vpop.permute.xlu0 %1925 }
 0x1ab   : > { %v1928_v26 = vunpack.i.h.bf16 %v1926_v28  ;;  %v1927_v42 = vunpack.i.l.bf16 %v1926_v28 }
 0x1ac   : > { %v781_v25 = vsel %vm778_vm9, %v772_v17, %v1912_v19  ;;  %v782_v50 = vsel %vm778_vm9, %v773_v20, %v1913_v16 }
 0x1ad   : > { %v790_v27 = vsel %vm787_vm10, %v781_v25, %v1917_v13  ;;  %v791_v30 = vsel %vm787_vm10, %v782_v50, %v1918_v12  ;;  %v730_v36 = vsel %vm724_vm3, %v2451_v24, %v1928_v26  ;;  %v729_v41 = vsel %vm724_vm3, %v2409_v32, %v1927_v42 }
 0x1ae   : > { %v797_v55 = vpack.c.bf16 %v791_v30, %v790_v27  ;;  %v1966_v39 = vpop.permute.xlu2 %1965 }
 0x1af   : > { %v1968_v7 = vunpack.i.h.bf16 %v1966_v39  ;;  %v1967_v8 = vunpack.i.l.bf16 %v1966_v39 }
 0x1b1   : > { %v1931_v5 = vpop.permute.xlu1 %1930  ;;  %1575 = vmatmul.msk.bf16.gmra.mxu0 %vm824_vm11, %v797_v55  ;;  %v732_v15 = vsel %vm724_vm3, %v2489_v9, %v1968_v7  ;;  %v731_v16 = vsel %vm724_vm3, %v2448_v29, %v1967_v8 }
 0x1b2   : > { %v1933_v33 = vunpack.i.h.bf16 %v1931_v5  ;;  %v1932_v34 = vunpack.i.l.bf16 %v1931_v5  ;;  %v1936_v35 = vpop.permute.xlu0 %1935 }
 0x1b3   : > { %v1938_v47 = vunpack.i.h.bf16 %v1936_v35  ;;  %v1937_v48 = vunpack.i.l.bf16 %v1936_v35 }
 0x1b4   : > { %v738_v43 = vsel %vm733_vm4, %v729_v41, %v1932_v34  ;;  %v739_v63 = vsel %vm733_vm4, %v730_v36, %v1933_v33 }
 0x1b5   : > { %v747_v44 = vsel %vm742_vm5, %v738_v43, %v1882_v18  ;;  %v748_v45 = vsel %vm742_vm5, %v739_v63, %v1883_v23 }
 0x1b6   : > { %v756_v32 = vsel %vm751_vm6, %v747_v44, %v1937_v48  ;;  %v757_v21 = vsel %vm751_vm6, %v748_v45, %v1938_v47  ;;  %v1976_v6 = vpop.permute.xlu2 %1975  ;;  %v1679_v47 = vld [vmem:[%s2961_s3 + $0x88] sm:$0xff]  ;;  %v2622_v48 = vld [vmem:[%s2960_s2] ss:$0 sm:$0xff] }
 0x1b7   : > { %v1978_v28 = vunpack.i.h.bf16 %v1976_v6  ;;  %v1977_v25 = vunpack.i.l.bf16 %v1976_v6  ;;  %1442 = vmatpush.bf16.msra.mxu3 %v1679_v47 }
 0x1b9   : > { %v1941_v46 = vpop.permute.xlu1 %1940 }
 0x1ba   : > { %v1943_v49 = vunpack.i.h.bf16 %v1941_v46  ;;  %v1942_v24 = vunpack.i.l.bf16 %v1941_v46  ;;  %v1946_v54 = vpop.permute.xlu0 %1945 }
 0x1bb   : > { %v1948_v58 = vunpack.i.h.bf16 %v1946_v54  ;;  %v1947_v59 = vunpack.i.l.bf16 %v1946_v54 }
 0x1bc   : > { %v765_v22 = vsel %vm760_vm7, %v756_v32, %v1942_v24  ;;  %v766_v60 = vsel %vm760_vm7, %v757_v21, %v1943_v49  ;;  %v1678_v49 = vld [vmem:[%s2961_s3 + $0x80] sm:$0xff] }
 0x1bd   : > { %v774_v56 = vsel %vm769_vm8, %v765_v22, %v1922_v40  ;;  %v775_v57 = vsel %vm769_vm8, %v766_v60, %v1923_v1  ;;  %1443 = vmatpush.bf16.msra.mxu3 %v1678_v49 }
 0x1be   : > { %v783_v62 = vsel %vm778_vm9, %v774_v56, %v1947_v59  ;;  %v784_v52 = vsel %vm778_vm9, %v775_v57, %v1948_v58  ;;  %v1986_v50 = vpop.permute.xlu2 %1985  ;;  %v2190_v57 = vmov 0.0  }
 0x1bf   : > { %v1988_v5 = vunpack.i.h.bf16 %v1986_v50  ;;  %v1987_v61 = vunpack.i.l.bf16 %v1986_v50  ;;  %v887_v58 = vrot.slane %v2190_v57, 7 }
 0x1c1   : > { %v1951_v38 = vpop.permute.xlu1 %1950  ;;  %v915_v7 = vsel %vm905_vm12, %v887_v58, 0.0 }
 0x1c2   : > { %v1953_v31 = vunpack.i.h.bf16 %v1951_v38  ;;  %v1952_v51 = vunpack.i.l.bf16 %v1951_v38  ;;  %v1971_v53 = vpop.permute.xlu0 %1970 }
 0x1c3   : > { %v1973_v37 = vunpack.i.h.bf16 %v1971_v53  ;;  %v1972_v11 = vunpack.i.l.bf16 %v1971_v53 }
 0x1c4   : > { %v792_v0 = vsel %vm787_vm10, %v783_v62, %v1952_v51  ;;  %v793_v2 = vsel %vm787_vm10, %v784_v52, %v1953_v31 }
 0x1c5   : > { %v798_v4 = vpack.c.bf16 %v793_v2, %v792_v0  ;;  %v741_v12 = vsel %vm733_vm4, %v732_v15, %v1973_v37  ;;  %v740_v13 = vsel %vm733_vm4, %v731_v16, %v1972_v11  ;;  %v2641_v2 = vsel %vm905_vm12, 0.0, %v887_v58 }
 0x1c6   : > { %v940_v11 = vrot.slane %v2641_v2, 1  ;;  %v941_v15 = vrot.slane %v915_v7, 1 }
 0x1c7   : > { %1576 = vmatmul.msk.bf16.gmra.mxu0 %vm824_vm11, %v798_v4 }
 0x1c9   : > { %v1956_v3 = vpop.permute.xlu1 %1955 }
 0x1ca   : > { %v1958_v10 = vunpack.i.h.bf16 %v1956_v3  ;;  %v1957_v14 = vunpack.i.l.bf16 %v1956_v3  ;;  %v1981_v19 = vpop.permute.xlu0 %1980 }
 0x1cb   : > { %v1983_v9 = vunpack.i.h.bf16 %v1981_v19  ;;  %v1982_v55 = vunpack.i.l.bf16 %v1981_v19 }
 0x1cc   : > { %v749_v20 = vsel %vm742_vm5, %v740_v13, %v1957_v14  ;;  %v750_v17 = vsel %vm742_vm5, %v741_v12, %v1958_v10 }
 0x1cd   : > { %v758_v27 = vsel %vm751_vm6, %v749_v20, %v1977_v25  ;;  %v759_v30 = vsel %vm751_vm6, %v750_v17, %v1978_v28  ;;  %v988_v20 = vrot.slane %v2641_v2, 2 }
 0x1ce   : > { %v767_v33 = vsel %vm760_vm7, %v758_v27, %v1982_v55  ;;  %v768_v34 = vsel %vm760_vm7, %v759_v30, %v1983_v9  ;;  %v2664_v55 = vsel %vm466_vm1, %v940_v11, %v941_v15 }
 0x1d1   : > { %v1961_v26 = vpop.permute.xlu1 %1960 }
 0x1d2   : > { %v1963_v29 = vunpack.i.h.bf16 %v1961_v26  ;;  %v1962_v42 = vunpack.i.l.bf16 %v1961_v26  ;;  %v1991_v35 = vpop.permute.xlu0 %1990 }
 0x1d3   : > { %v1993_v43 = vunpack.i.h.bf16 %v1991_v35  ;;  %v1992_v63 = vunpack.i.l.bf16 %v1991_v35 }
 0x1d4   : > { %v776_v36 = vsel %vm769_vm8, %v767_v33, %v1962_v42  ;;  %v777_v41 = vsel %vm769_vm8, %v768_v34, %v1963_v29 }
 0x1d5   : > { %v785_v23 = vsel %vm778_vm9, %v776_v36, %v1987_v61  ;;  %v786_v18 = vsel %vm778_vm9, %v777_v41, %v1988_v5  ;;  %v989_v61 = vrot.slane %v915_v7, 2 }
 0x1d6   : > { %v794_v44 = vsel %vm787_vm10, %v785_v23, %v1992_v63  ;;  %v795_v45 = vsel %vm787_vm10, %v786_v18, %v1993_v43 }
 0x1d7   : > { %v799_v46 = vpack.c.bf16 %v795_v45, %v794_v44  ;;  %v2686_v43 = vsel %vm515_vm0, %v988_v20, %v989_v61 }
 0x1d9   : > { %1577 = vmatmul.msk.bf16.gmra.mxu0 %vm824_vm11, %v799_v46 }
 0x21e   : > { %v850_v24 = vpop.f32.mrf.mxu0 }
 0x21f   : > { %v851_v54 = vadd.f32 %v2622_v48, %v850_v24 }
 0x221   : > { %v870_v39 = vmax.f32 %v851_v54, 0.0 }
 0x223   : > { %v888_v32 = vrot.slane %v870_v39, 7 }
 0x225   : > { %v2630_v60 = vsel %vm905_vm12, 0.0, %v888_v32  ;;  %v916_v1 = vsel %vm905_vm12, %v888_v32, 0.0 }
 0x226   : > { %v852_v21 = vpop.f32.mrf.mxu0  ;;  %v991_v59 = vrot.slane %v2630_v60, 2  ;;  %v992_v38 = vrot.slane %v916_v1, 2  ;;  %v943_v3 = vrot.slane %v2630_v60, 1  ;;  %v944_v10 = vrot.slane %v916_v1, 1 }
 0x227   : > { %v853_v22 = vadd.f32 %v2622_v48, %v852_v21 }
 0x228   : > { %v993_v4 = vsel %vm515_vm0, %v991_v59, %v992_v38  ;;  %v2667_v26 = vsel %vm466_vm1, %v943_v3, %v944_v10 }
 0x229   : > { %v871_v40 = vmax.f32 %v853_v22, 0.0  ;;  %v1999_v36 = vpack.i.bf16 %v2667_v26, %v2664_v55  ;;  %v2009_v45 = vpack.i.bf16 %v993_v4, %v2686_v43 }
 0x22b   : > { %v889_v56 = vrot.slane %v871_v40, 7 }
 0x22d   : > { %v2635_v31 = vsel %vm905_vm12, 0.0, %v889_v56  ;;  %v917_v51 = vsel %vm905_vm12, %v889_v56, 0.0 }
 0x22e   : > { %v994_v62 = vrot.slane %v2635_v31, 2  ;;  %v995_v52 = vrot.slane %v917_v51, 2  ;;  %v855_v53 = vpop.f32.mrf.mxu0  ;;  %v946_v16 = vrot.slane %v2635_v31, 1  ;;  %v947_v19 = vrot.slane %v917_v51, 1 }
 0x22f   : > { %v856_v0 = vadd.f32 %v2622_v48, %v855_v53  ;;  %v2019_v47 = vpack.i.bf16 %v2635_v31, %v2630_v60 }
 0x230   : > { %v2645_v6 = vsel %vm515_vm0, %v994_v62, %v995_v52  ;;  %v2671_v42 = vsel %vm466_vm1, %v946_v16, %v947_v19 }
 0x231   : > { %v872_v8 = vmax.f32 %v856_v0, 0.0  ;;  %v1994_v37 = vpack.i.bf16 %v2645_v6, %v993_v4 }
 0x233   : > { %v890_v14 = vrot.slane %v872_v8, 7  ;;  %1995 = vrot.lane.b32.xlu1 %v1994_v37, %s2189_s25 }
 0x235   : > { %v2654_v12 = vsel %vm905_vm12, 0.0, %v890_v14  ;;  %v918_v13 = vsel %vm905_vm12, %v890_v14, 0.0 }
 0x236   : > { %v949_v17 = vrot.slane %v2654_v12, 1  ;;  %v950_v28 = vrot.slane %v918_v13, 1  ;;  %v997_v25 = vrot.slane %v2654_v12, 2  ;;  %v998_v50 = vrot.slane %v918_v13, 2  ;;  %v857_v27 = vpop.f32.mrf.mxu0 }
 0x237   : > { %v858_v30 = vadd.f32 %v2622_v48, %v857_v27  ;;  %v2004_v9 = vpack.i.bf16 %v2654_v12, %v2635_v31 }
 0x238   : > { %v999_v29 = vsel %vm515_vm0, %v997_v25, %v998_v50  ;;  %v2674_v5 = vsel %vm466_vm1, %v949_v17, %v950_v28 }
 0x239   : > { %v873_v33 = vmax.f32 %v858_v30, 0.0  ;;  %2005 = vrot.lane.b32.xlu2 %v2004_v9, %s2191_s17  ;;  %v1208_v34 = vpack.c.bf16 %v999_v29, %v2645_v6  ;;  %v2014_v35 = vpack.i.bf16 %v2674_v5, %v2671_v42  ;;  %v2039_v15 = vpack.i.bf16 %v999_v29, %v2645_v6 }
 0x23b   : > { %v891_v41 = vrot.slane %v873_v33, 7  ;;  %1650 = vmatmul.msk.bf16.vlgmr.msra.gmra.mxu3 %vm787_vm10, %v1208_v34  ;;  %2015 = vrot.lane.b32.xlu0 %v2014_v35, %s2192_s23 }
 0x23c   : > { %2000 = vrot.lane.b32.xlu1 %v1999_v36, %s2189_s25 }
 0x23d   : > { %v2689_v63 = vsel %vm905_vm12, 0.0, %v891_v41  ;;  %v919_v23 = vsel %vm905_vm12, %v891_v41, 0.0 }
 0x23e   : > { %v1000_v18 = vrot.slane %v2689_v63, 2  ;;  %v1001_v44 = vrot.slane %v919_v23, 2  ;;  %v952_v21 = vrot.slane %v2689_v63, 1  ;;  %v953_v22 = vrot.slane %v919_v23, 1 }
 0x23f   : > { %v2049_v20 = vpack.i.bf16 %v2689_v63, %v2654_v12 }
 0x240   : > { %v2695_v46 = vsel %vm515_vm0, %v1000_v18, %v1001_v44  ;;  %v2717_v53 = vsel %vm466_vm1, %v952_v21, %v953_v22 }
 0x241   : > { %2010 = vrot.lane.b32.xlu2 %v2009_v45, %s2191_s17  ;;  %v2024_v49 = vpack.i.bf16 %v2695_v46, %v999_v29 }
 0x243   : > { %2020 = vrot.lane.b32.xlu0 %v2019_v47, %s2192_s23 }
 0x244   : > { %v860_v24 = vpop.f32.mrf.mxu0  ;;  %2025 = vrot.lane.b32.xlu1 %v2024_v49, %s2189_s25 }
 0x245   : > { %v861_v54 = vadd.f32 %v2622_v48, %v860_v24 }
 0x247   : > { %v874_v39 = vmax.f32 %v861_v54, 0.0 }
 0x249   : > { %v892_v32 = vrot.slane %v874_v39, 7 }
 0x24b   : > { %v2706_v1 = vsel %vm905_vm12, 0.0, %v892_v32  ;;  %v920_v40 = vsel %vm905_vm12, %v892_v32, 0.0 }
 0x24c   : > { %v955_v56 = vrot.slane %v2706_v1, 1  ;;  %v956_v57 = vrot.slane %v920_v40, 1  ;;  %v1003_v58 = vrot.slane %v2706_v1, 2  ;;  %v1004_v59 = vrot.slane %v920_v40, 2  ;;  %v862_v38 = vpop.f32.mrf.mxu0  ;;  %2030 = vrot.lane.b32.xlu1 %v2014_v35, %s2189_s25 }
 0x24d   : > { %v863_v51 = vadd.f32 %v2622_v48, %v862_v38  ;;  %v2034_v62 = vpack.i.bf16 %v2706_v1, %v2689_v63 }
 0x24e   : > { %v1005_v52 = vsel %vm515_vm0, %v1003_v58, %v1004_v59  ;;  %v2720_v0 = vsel %vm466_vm1, %v955_v56, %v956_v57 }
 0x24f   : > { %v875_v4 = vmax.f32 %v863_v51, 0.0  ;;  %2035 = vrot.lane.b32.xlu2 %v2034_v62, %s2191_s17  ;;  %v1211_v7 = vpack.c.bf16 %v1005_v52, %v2695_v46  ;;  %v2044_v8 = vpack.i.bf16 %v2720_v0, %v2717_v53  ;;  %v2069_v32 = vpack.i.bf16 %v1005_v52, %v2695_v46  ;;  %v1677_v51 = vld [vmem:[%s2961_s3 + $0x78] sm:$0xff] }
 0x250   : > { %1407 = vmatpush.bf16.msra.mxu2 %v1677_v51 }
 0x251   : > { %v893_v37 = vrot.slane %v875_v4, 7  ;;  %1651 = vmatmul.msk.bf16.gmra.mxu3 %vm787_vm10, %v1211_v7  ;;  %2045 = vrot.lane.b32.xlu0 %v2044_v8, %s2192_s23  ;;  %v1675_v4 = vld [vmem:[%s2961_s3 + $0x68] sm:$0xff]  ;;  %v1668_v7 = vld [vmem:[%s2961_s3 + $0x30] sm:$0xff] }
 0x253   : > { %v2729_v11 = vsel %vm905_vm12, 0.0, %v893_v37  ;;  %v921_v3 = vsel %vm905_vm12, %v893_v37, 0.0  ;;  %v1667_v37 = vld [vmem:[%s2961_s3 + $0x28] sm:$0xff] }
 0x254   : > { %v1006_v10 = vrot.slane %v2729_v11, 2  ;;  %v1007_v14 = vrot.slane %v921_v3, 2  ;;  %v958_v50 = vrot.slane %v2729_v11, 1  ;;  %v959_v6 = vrot.slane %v921_v3, 1  ;;  %v1673_v3 = vld [vmem:[%s2961_s3 + $0x58] sm:$0xff] }
 0x255   : > { %v2079_v22 = vpack.i.bf16 %v2729_v11, %v2706_v1 }
 0x256   : > { %v865_v16 = vpop.f32.mrf.mxu0  ;;  %v1008_v19 = vsel %vm515_vm0, %v1006_v10, %v1007_v14  ;;  %v2753_v23 = vsel %vm466_vm1, %v958_v50, %v959_v6  ;;  %v1666_v10 = vld [vmem:[%s2961_s3 + $0x20] sm:$0xff]  ;;  %v1672_v14 = vld [vmem:[%s2961_s3 + $0x50] sm:$0xff] }
 0x257   : > { %v866_v13 = vadd.f32 %v2622_v48, %v865_v16  ;;  %2040 = vrot.lane.b32.xlu2 %v2039_v15, %s2191_s17  ;;  %v2054_v17 = vpack.i.bf16 %v1008_v19, %v1005_v52  ;;  %v1676_v52 = vld [vmem:[%s2961_s3 + $0x70] sm:$0xff]  ;;  %v1665_v15 = vld [vmem:[%s2961_s3 + $0x18] sm:$0xff]  ;;  %v1671_v16 = vld [vmem:[%s2961_s3 + $0x48] sm:$0xff] }
 0x258   : > { %1408 = vmatpush.bf16.msra.mxu2 %v1676_v52 }
 0x259   : > { %v876_v28 = vmax.f32 %v866_v13, 0.0  ;;  %2050 = vrot.lane.b32.xlu0 %v2049_v20, %s2192_s23  ;;  %2055 = vrot.lane.b32.xlu1 %v2054_v17, %s2189_s25  ;;  %v1670_v13 = vld [vmem:[%s2961_s3 + $0x40] sm:$0xff]  ;;  %v1663_v20 = vld [vmem:[%s2961_s3 + $0x8] sm:$0xff] }
 0x25a   : > { %v1662_v17 = vld [vmem:[%s2961_s3] sm:$0xff] }
 0x25b   : > { %v894_v25 = vrot.slane %v876_v28, 7 }
 0x25c   : > { %1409 = vmatpush.bf16.msra.mxu2 %v1675_v4 }
 0x25d   : > { %v2743_v27 = vsel %vm905_vm12, 0.0, %v894_v25  ;;  %v922_v30 = vsel %vm905_vm12, %v894_v25, 0.0 }
 0x25e   : > { %v961_v9 = vrot.slane %v2743_v27, 1  ;;  %v962_v29 = vrot.slane %v922_v30, 1  ;;  %v1009_v61 = vrot.slane %v2743_v27, 2  ;;  %v1010_v33 = vrot.slane %v922_v30, 2  ;;  %v867_v34 = vpop.f32.mrf.mxu0 }
 0x25f   : > { %v868_v35 = vadd.f32 %v2622_v48, %v867_v34  ;;  %v2064_v36 = vpack.i.bf16 %v2743_v27, %v2729_v11 }
 0x260   : > { %v1011_v41 = vsel %vm515_vm0, %v1009_v61, %v1010_v33  ;;  %v2756_v18 = vsel %vm466_vm1, %v961_v9, %v962_v29 }
 0x261   : > { %v877_v44 = vmax.f32 %v868_v35, 0.0  ;;  %2065 = vrot.lane.b32.xlu2 %v2064_v36, %s2191_s17  ;;  %2060 = vrot.lane.b32.xlu1 %v2044_v8, %s2189_s25  ;;  %v1214_v45 = vpack.c.bf16 %v1011_v41, %v1008_v19  ;;  %v2074_v48 = vpack.i.bf16 %v2756_v18, %v2753_v23  ;;  %v2104_v62 = vpack.i.bf16 %v1011_v41, %v1008_v19  ;;  %v1674_v8 = vld [vmem:[%s2961_s3 + $0x60] sm:$0xff]  ;;  %v1664_v19 = vld [vmem:[%s2961_s3 + $0x10] sm:$0xff] }
 0x262   : > { %1410 = vmatpush.bf16.msra.mxu2 %v1674_v8 }
 0x263   : > { %v895_v47 = vrot.slane %v877_v44, 7  ;;  %1652 = vmatmul.msk.bf16.gmra.mxu3 %vm787_vm10, %v1214_v45  ;;  %2075 = vrot.lane.b32.xlu0 %v2074_v48, %s2192_s23 }
 0x265   : > { %v914_v49 = vsel %vm905_vm12, 0.0, %v895_v47  ;;  %v923_v24 = vsel %vm905_vm12, %v895_v47, 0.0 }
 0x266   : > { %v1073_v54 = vrot.slane %v914_v49, 2  ;;  %v1074_v39 = vrot.slane %v923_v24, 2  ;;  %v1062_v56 = vrot.slane %v914_v49, 1  ;;  %v1063_v57 = vrot.slane %v923_v24, 1  ;;  %1411 = vmatpush.bf16.msra.mxu2 %v1673_v3 }
 0x267   : > { %v2084_v59 = vpack.i.bf16 %v2641_v2, %v914_v49 }
 0x268   : > { %v1075_v21 = vsel %vm515_vm0, %v1073_v54, %v1074_v39  ;;  %v2774_v58 = vsel %vm466_vm1, %v1062_v56, %v1063_v57 }
 0x269   : > { %2070 = vrot.lane.b32.xlu2 %v2069_v32, %s2191_s17  ;;  %v2089_v40 = vpack.i.bf16 %v1075_v21, %v1011_v41  ;;  %v1217_v46 = vpack.c.bf16 %v2686_v43, %v1075_v21  ;;  %v2094_v38 = vpack.i.bf16 %v2664_v55, %v2774_v58  ;;  %v2109_v55 = vpack.i.bf16 %v914_v49, %v2743_v27  ;;  %v1669_v43 = vld [vmem:[%s2961_s3 + $0x38] sm:$0xff] }
 0x26a   : > { %1378 = vmatpush.bf16.msra.mxu1 %v1669_v43  ;;  %1412 = vmatpush.bf16.msra.mxu2 %v1672_v14 }
 0x26b   : > { %2080 = vrot.lane.b32.xlu0 %v2079_v22, %s2192_s23  ;;  %2090 = vrot.lane.b32.xlu1 %v2089_v40, %s2189_s25 }
 0x26e   : > { %1379 = vmatpush.bf16.msra.mxu1 %v1668_v7  ;;  %1413 = vmatpush.bf16.msra.mxu2 %v1671_v16 }
 0x271   : > { %2085 = vrot.lane.b32.xlu2 %v2084_v59, %s2191_s17 }
 0x272   : > { %1380 = vmatpush.bf16.msra.mxu1 %v1667_v37  ;;  %1414 = vmatpush.bf16.msra.mxu2 %v1670_v13 }
 0x273   : > { %1653 = vmatmul.msk.bf16.gmra.mxu3 %vm787_vm10, %v1217_v46  ;;  %2095 = vrot.lane.b32.xlu0 %v2094_v38, %s2192_s23 }
 0x274   : > { %2100 = vrot.lane.b32.xlu1 %v2074_v48, %s2189_s25  ;;  %s2905_s25 = scalar_lea.vmem [#allocation2], %s1563_s9 }
 0x275   : > { %s1494_s15 = sshll.u32 %s2905_s25, 4  ;;  %s1495_s15 = int_to_ptr.vmem [resolvable:$true] %s1494_s15 }
 0x276   : > { %1381 = vmatpush.bf16.msra.mxu1 %v1666_v10 }
 0x279   : > { %2105 = vrot.lane.b32.xlu2 %v2104_v62, %s2191_s17  ;;  %s2130_s17 = sshra.s32 %s1497_s16, 4  ;;  %s2131_s17 = int_to_ptr.hbm [resolvable:$true] %s2130_s17 }
 0x27a   : > { %1382 = vmatpush.bf16.msra.mxu1 %v1665_v15  ;;  %p2137_p0 = scmp.lt.s32.totalorder %s2131_s17, %s2963_s5 }
 0x27b   : > { %2110 = vrot.lane.b32.xlu0 %v2109_v55, %s2192_s23  ;;  %s2132_s23 = scalar_lea.hbm %s2131_s17, 64 }
 0x27c   : > { %p2133_p11 = scmp.ne.s32.totalorder %s2131_s17, %s2132_s23  ;;  %p2138_p1 = scmp.lt.s32.totalorder %s2136_s6, %s2132_s23 }
 0x27e   : > { %1383 = vmatpush.bf16.msra.mxu1 %v1664_v19  ;;  %p2134_p12 = pnand %p2133_p11, %p2262_p5  ;;  %p2139_p2 = por %p2138_p1, %p2137_p0 }
 0x280   : > { %p2135_p13 = pneg %p2134_p12 }
 0x282   : > { %1384 = vmatpush.bf16.msra.mxu1 %v1663_v20  ;;  %p2140_p3 = pnand %p2139_p2, %p2135_p13 }
 0x286   : > { %1385 = vmatpush.bf16.msra.mxu1 %v1662_v17 }
 0x293   : > { %v2006_v25 = vpop.permute.xlu2 %2005 }
 0x294   : > { %v2008_v29 = vunpack.i.h.bf16 %v2006_v25  ;;  %v2007_v61 = vunpack.i.l.bf16 %v2006_v25 }
 0x29b   : > { %v2011_v49 = vpop.permute.xlu2 %2010 }
 0x29c   : > { %v2013_v39 = vunpack.i.h.bf16 %v2011_v49  ;;  %v2012_v32 = vunpack.i.l.bf16 %v2011_v49 }
 0x2a5   : > { %v1996_v28 = vpop.permute.xlu1 %1995 }
 0x2a6   : > { %v1998_v50 = vunpack.i.h.bf16 %v1996_v28  ;;  %v1997_v6 = vunpack.i.l.bf16 %v1996_v28 }
 0x2a8   : > { %v1183_v30 = vsel %vm787_vm10, %v2671_v42, %v1998_v50  ;;  %v1182_v9 = vsel %vm787_vm10, %v2667_v26, %v1997_v6 }
 0x2a9   : > { %v1190_v41 = vsel %vm1164_vm13, %v1182_v9, %v2007_v61  ;;  %v1191_v44 = vsel %vm1164_vm13, %v1183_v30, %v2008_v29  ;;  %v2036_v51 = vpop.permute.xlu2 %2035 }
 0x2aa   : > { %v2038_v43 = vunpack.i.h.bf16 %v2036_v51  ;;  %v2037_v4 = vunpack.i.l.bf16 %v2036_v51 }
 0x2ad   : > { %v2016_v33 = vpop.permute.xlu0 %2015 }
 0x2ae   : > { %v2018_v34 = vunpack.i.h.bf16 %v2016_v33  ;;  %v2017_v35 = vunpack.i.l.bf16 %v2016_v33  ;;  %v2001_v36 = vpop.permute.xlu1 %2000 }
 0x2af   : > { %v2003_v45 = vunpack.i.h.bf16 %v2001_v36  ;;  %v2002_v48 = vunpack.i.l.bf16 %v2001_v36 }
 0x2b0   : > { %v1198_v47 = vsel %vm1173_vm14, %v1190_v41, %v2017_v35  ;;  %v1199_v42 = vsel %vm1173_vm14, %v1191_v44, %v2018_v34 }
 0x2b1   : > { %v1207_v26 = vpack.c.bf16 %v1199_v42, %v1198_v47  ;;  %v1157_v24 = vsel %vm787_vm10, %v2630_v60, %v2003_v45  ;;  %v1156_v54 = vsel %vm787_vm10, %v2641_v2, %v2002_v48  ;;  %v2041_v37 = vpop.permute.xlu2 %2040 }
 0x2b2   : > { %v1165_v56 = vsel %vm1164_vm13, %v1156_v54, %v2012_v32  ;;  %v1166_v57 = vsel %vm1164_vm13, %v1157_v24, %v2013_v39  ;;  %v2043_v28 = vunpack.i.h.bf16 %v2041_v37  ;;  %v2042_v25 = vunpack.i.l.bf16 %v2041_v37 }
 0x2b3   : > { %1415 = vmatmul.bf16.vlgmr.msra.gmra.mxu2 %v1207_v26 }
 0x2b5   : > { %v2021_v21 = vpop.permute.xlu0 %2020 }
 0x2b6   : > { %v2023_v22 = vunpack.i.h.bf16 %v2021_v21  ;;  %v2022_v40 = vunpack.i.l.bf16 %v2021_v21  ;;  %v2026_v59 = vpop.permute.xlu1 %2025 }
 0x2b7   : > { %v2028_v62 = vunpack.i.h.bf16 %v2026_v59  ;;  %v2027_v2 = vunpack.i.l.bf16 %v2026_v59 }
 0x2b8   : > { %v1174_v46 = vsel %vm1173_vm14, %v1165_v56, %v2022_v40  ;;  %v1175_v38 = vsel %vm1173_vm14, %v1166_v57, %v2023_v22 }
 0x2b9   : > { %v1206_v60 = vpack.c.bf16 %v1175_v38, %v1174_v46  ;;  %v1185_v52 = vsel %vm787_vm10, %v2717_v53, %v2028_v62  ;;  %v1184_v55 = vsel %vm787_vm10, %v2674_v5, %v2027_v2 }
 0x2ba   : > { %v1192_v14 = vsel %vm1164_vm13, %v1184_v55, %v2037_v4  ;;  %v1193_v15 = vsel %vm1164_vm13, %v1185_v52, %v2038_v43 }
 0x2bb   : > { %1386 = vmatmul.bf16.vlgmr.msra.gmra.mxu1 %v1206_v60  ;;  %v2066_v6 = vpop.permute.xlu2 %2065 }
 0x2bc   : > { %v2068_v45 = vunpack.i.h.bf16 %v2066_v6  ;;  %v2067_v48 = vunpack.i.l.bf16 %v2066_v6 }
 0x2be   : > { %v2031_v7 = vpop.permute.xlu1 %2030 }
 0x2bf   : > { %v2033_v16 = vunpack.i.h.bf16 %v2031_v7  ;;  %v2032_v19 = vunpack.i.l.bf16 %v2031_v7 }
 0x2c1   : > { %v1159_v5 = vsel %vm787_vm10, %v2654_v12, %v2033_v16  ;;  %v1158_v17 = vsel %vm787_vm10, %v2635_v31, %v2032_v19 }
 0x2c2   : > { %v1167_v61 = vsel %vm1164_vm13, %v1158_v17, %v2042_v25  ;;  %v1168_v33 = vsel %vm1164_vm13, %v1159_v5, %v2043_v28 }
 0x2c3   : > { %v2046_v8 = vpop.permute.xlu0 %2045  ;;  %v2071_v49 = vpop.permute.xlu2 %2070 }
 0x2c4   : > { %v2048_v3 = vunpack.i.h.bf16 %v2046_v8  ;;  %v2047_v10 = vunpack.i.l.bf16 %v2046_v8  ;;  %v2073_v57 = vunpack.i.h.bf16 %v2071_v49  ;;  %v2072_v59 = vunpack.i.l.bf16 %v2071_v49 }
 0x2c6   : > { %v1200_v13 = vsel %vm1173_vm14, %v1192_v14, %v2047_v10  ;;  %v1201_v53 = vsel %vm1173_vm14, %v1193_v15, %v2048_v3 }
 0x2c7   : > { %v1210_v20 = vpack.c.bf16 %v1201_v53, %v1200_v13 }
 0x2c9   : > { %1420 = vmatmul.bf16.gmra.mxu2 %v1210_v20 }
 0x2cb   : > { %v2051_v50 = vpop.permute.xlu0 %2050  ;;  %v2056_v29 = vpop.permute.xlu1 %2055 }
 0x2cc   : > { %v2053_v30 = vunpack.i.h.bf16 %v2051_v50  ;;  %v2052_v9 = vunpack.i.l.bf16 %v2051_v50  ;;  %v2058_v12 = vunpack.i.h.bf16 %v2056_v29  ;;  %v2057_v41 = vunpack.i.l.bf16 %v2056_v29  ;;  %v2086_v52 = vpop.permute.xlu2 %2085 }
 0x2cd   : > { %v2088_v37 = vunpack.i.h.bf16 %v2086_v52  ;;  %v2087_v3 = vunpack.i.l.bf16 %v2086_v52 }
 0x2ce   : > { %v1176_v34 = vsel %vm1173_vm14, %v1167_v61, %v2052_v9  ;;  %v1177_v35 = vsel %vm1173_vm14, %v1168_v33, %v2053_v30  ;;  %v1187_v31 = vsel %vm787_vm10, %v2753_v23, %v2058_v12  ;;  %v1186_v44 = vsel %vm787_vm10, %v2720_v0, %v2057_v41 }
 0x2cf   : > { %v1209_v36 = vpack.c.bf16 %v1177_v35, %v1176_v34  ;;  %v1194_v54 = vsel %vm1164_vm13, %v1186_v44, %v2067_v48  ;;  %v1195_v39 = vsel %vm1164_vm13, %v1187_v31, %v2068_v45 }
 0x2d1   : > { %1391 = vmatmul.bf16.gmra.mxu1 %v1209_v36 }
 0x2d3   : > { %v2061_v47 = vpop.permute.xlu1 %2060 }
 0x2d4   : > { %v2063_v32 = vunpack.i.h.bf16 %v2061_v47  ;;  %v2062_v21 = vunpack.i.l.bf16 %v2061_v47  ;;  %v2106_v28 = vpop.permute.xlu2 %2105 }
 0x2d5   : > { %v2076_v42 = vpop.permute.xlu0 %2075  ;;  %v2108_v50 = vunpack.i.h.bf16 %v2106_v28  ;;  %v2107_v6 = vunpack.i.l.bf16 %v2106_v28 }
 0x2d6   : > { %v2078_v26 = vunpack.i.h.bf16 %v2076_v42  ;;  %v2077_v24 = vunpack.i.l.bf16 %v2076_v42  ;;  %v1161_v0 = vsel %vm787_vm10, %v2706_v1, %v2063_v32  ;;  %v1160_v56 = vsel %vm787_vm10, %v2689_v63, %v2062_v21 }
 0x2d7   : > { %v1169_v62 = vsel %vm1164_vm13, %v1160_v56, %v2072_v59  ;;  %v1170_v2 = vsel %vm1164_vm13, %v1161_v0, %v2073_v57 }
 0x2d8   : > { %v1202_v22 = vsel %vm1173_vm14, %v1194_v54, %v2077_v24  ;;  %v1203_v23 = vsel %vm1173_vm14, %v1195_v39, %v2078_v26 }
 0x2d9   : > { %v1213_v40 = vpack.c.bf16 %v1203_v23, %v1202_v22 }
 0x2db   : > { %1425 = vmatmul.bf16.gmra.mxu2 %v1213_v40 }
 0x2dd   : > { %v2081_v46 = vpop.permute.xlu0 %2080  ;;  %v2091_v38 = vpop.permute.xlu1 %2090 }
 0x2de   : > { %v2083_v51 = vunpack.i.h.bf16 %v2081_v46  ;;  %v2082_v60 = vunpack.i.l.bf16 %v2081_v46  ;;  %v2093_v55 = vunpack.i.h.bf16 %v2091_v38  ;;  %v2092_v43 = vunpack.i.l.bf16 %v2091_v38 }
 0x2e0   : > { %v1178_v4 = vsel %vm1173_vm14, %v1169_v62, %v2082_v60  ;;  %v1179_v1 = vsel %vm1173_vm14, %v1170_v2, %v2083_v51  ;;  %v1189_v63 = vsel %vm787_vm10, %v2774_v58, %v2093_v55  ;;  %v1188_v8 = vsel %vm787_vm10, %v2756_v18, %v2092_v43 }
 0x2e1   : > { %v1212_v7 = vpack.c.bf16 %v1179_v1, %v1178_v4  ;;  %v1196_v19 = vsel %vm1164_vm13, %v1188_v8, %v2087_v3  ;;  %v1197_v13 = vsel %vm1164_vm13, %v1189_v63, %v2088_v37 }
 0x2e3   : > { %1396 = vmatmul.bf16.gmra.mxu1 %v1212_v7 }
 0x2e5   : > { %v2096_v10 = vpop.permute.xlu0 %2095 }
 0x2e6   : > { %v2098_v14 = vunpack.i.h.bf16 %v2096_v10  ;;  %v2097_v15 = vunpack.i.l.bf16 %v2096_v10  ;;  %v2101_v16 = vpop.permute.xlu1 %2100 }
 0x2e7   : > { %v2103_v53 = vunpack.i.h.bf16 %v2101_v16  ;;  %v2102_v20 = vunpack.i.l.bf16 %v2101_v16 }
 0x2e8   : > { %v1204_v5 = vsel %vm1173_vm14, %v1196_v19, %v2097_v15  ;;  %v1205_v17 = vsel %vm1173_vm14, %v1197_v13, %v2098_v14 }
 0x2e9   : > { %v1216_v58 = vpack.c.bf16 %v1205_v17, %v1204_v5  ;;  %v1163_v18 = vsel %vm787_vm10, %v2743_v27, %v2103_v53  ;;  %v1162_v25 = vsel %vm787_vm10, %v2729_v11, %v2102_v20  ;;  %v2115_v11 = vld [vmem:[%s2962_s4] ss:$0 sm:$0xff]  ;;  %v1445_v27 = vpop.f32.mrf.mxu3 }
 0x2ea   : > { %v1171_v61 = vsel %vm1164_vm13, %v1162_v25, %v2107_v6  ;;  %v1172_v33 = vsel %vm1164_vm13, %v1163_v18, %v2108_v50 }
 0x2eb   : > { %1430 = vmatmul.bf16.gmra.mxu2 %v1216_v58 }
 0x2ed   : > { %v2111_v30 = vpop.permute.xlu0 %2110 }
 0x2ee   : > { %v2113_v9 = vunpack.i.h.bf16 %v2111_v30  ;;  %v2112_v29 = vunpack.i.l.bf16 %v2111_v30 }
 0x2f0   : > { %v1180_v34 = vsel %vm1173_vm14, %v1171_v61, %v2112_v29  ;;  %v1181_v35 = vsel %vm1173_vm14, %v1172_v33, %v2113_v9 }
 0x2f1   : > { %v1215_v36 = vpack.c.bf16 %v1181_v35, %v1180_v34  ;;  %v1447_v49 = vpop.f32.mrf.mxu3 }
 0x2f3   : > { %1401 = vmatmul.bf16.gmra.mxu1 %v1215_v36 }
 0x2f9   : > { %v1450_v32 = vpop.f32.mrf.mxu3 }
 0x301   : > { %v1452_v56 = vpop.f32.mrf.mxu3 }
 0x309   : > { %v1455_v2 = vpop.f32.mrf.mxu3 }
 0x311   : > { %v1457_v8 = vpop.f32.mrf.mxu3 }
 0x319   : > { %v1460_v53 = vpop.f32.mrf.mxu3 }
 0x321   : > { %v1462_v50 = vpop.f32.mrf.mxu3 }
 0x336   : > { %v1416_v12 = vpop.f32.mrf.mxu2 }
 0x338   : > { %v1387_v41 = vpop.f32.mrf.mxu1 }
 0x339   : > { %v1388_v31 = vadd.f32 %v2115_v11, %v1387_v41 }
 0x33b   : > { %v1417_v44 = vadd.f32 %v1416_v12, %v1388_v31 }
 0x33d   : > { %v1446_v45 = vadd.f32 %v1445_v27, %v1417_v44 }
 0x33e   : > { %v1418_v26 = vpop.f32.mrf.mxu2 }
 0x33f   : > { %v1465_v48 = vmax.f32 %v1446_v45, 0.0 }
 0x340   : > { %v1389_v47 = vpop.f32.mrf.mxu1 }
 0x341   : > { %1473 = vst.msk [vmem:[%s2905_s25] sm:$0xff] %vm787_vm10, %v1465_v48  ;;  %v1390_v42 = vadd.f32 %v2115_v11, %v1389_v47 }
 0x343   : > { %v1419_v24 = vadd.f32 %v1418_v26, %v1390_v42 }
 0x345   : > { %v1448_v54 = vadd.f32 %v1447_v49, %v1419_v24 }
 0x347   : > { %v1466_v39 = vmax.f32 %v1448_v54, 0.0 }
 0x349   : > { %1474 = vst.msk [vmem:[%s2905_s25 + $0x8] sm:$0xff] %vm787_vm10, %v1466_v39 }
 0x34c   : > { %v1421_v21 = vpop.f32.mrf.mxu2 }
 0x34e   : > { %v1392_v22 = vpop.f32.mrf.mxu1 }
 0x34f   : > { %v1393_v23 = vadd.f32 %v2115_v11, %v1392_v22 }
 0x351   : > { %v1422_v40 = vadd.f32 %v1421_v21, %v1393_v23 }
 0x353   : > { %v1451_v0 = vadd.f32 %v1450_v32, %v1422_v40 }
 0x354   : > { %v1423_v59 = vpop.f32.mrf.mxu2 }
 0x355   : > { %v1467_v57 = vmax.f32 %v1451_v0, 0.0 }
 0x356   : > { %v1394_v46 = vpop.f32.mrf.mxu1 }
 0x357   : > { %1475 = vst.msk [vmem:[%s2905_s25 + $0x10] sm:$0xff] %vm787_vm10, %v1467_v57  ;;  %v1395_v38 = vadd.f32 %v2115_v11, %v1394_v46 }
 0x359   : > { %v1424_v51 = vadd.f32 %v1423_v59, %v1395_v38 }
 0x35b   : > { %v1453_v60 = vadd.f32 %v1452_v56, %v1424_v51 }
 0x35d   : > { %v1468_v62 = vmax.f32 %v1453_v60, 0.0 }
 0x35e   : > { %v1426_v52 = vpop.f32.mrf.mxu2 }
 0x35f   : > { %1476 = vst.msk [vmem:[%s2905_s25 + $0x18] sm:$0xff] %vm787_vm10, %v1468_v62 }
 0x360   : > { %v1397_v55 = vpop.f32.mrf.mxu1 }
 0x361   : > { %v1398_v43 = vadd.f32 %v2115_v11, %v1397_v55 }
 0x363   : > { %v1427_v4 = vadd.f32 %v1426_v52, %v1398_v43 }
 0x365   : > { %v1456_v1 = vadd.f32 %v1455_v2, %v1427_v4 }
 0x366   : > { %v1428_v7 = vpop.f32.mrf.mxu2 }
 0x367   : > { %v1469_v63 = vmax.f32 %v1456_v1, 0.0 }
 0x368   : > { %v1399_v37 = vpop.f32.mrf.mxu1 }
 0x369   : > { %1477 = vst.msk [vmem:[%s2905_s25 + $0x20] sm:$0xff] %vm787_vm10, %v1469_v63  ;;  %v1400_v3 = vadd.f32 %v2115_v11, %v1399_v37 }
 0x36b   : > { %v1429_v10 = vadd.f32 %v1428_v7, %v1400_v3 }
 0x36d   : > { %v1458_v14 = vadd.f32 %v1457_v8, %v1429_v10 }
 0x36e   : > { %v1431_v16 = vpop.f32.mrf.mxu2 }
 0x36f   : > { %v1470_v15 = vmax.f32 %v1458_v14, 0.0 }
 0x370   : > { %v1402_v19 = vpop.f32.mrf.mxu1 }
 0x371   : > { %1478 = vst.msk [vmem:[%s2905_s25 + $0x28] sm:$0xff] %vm787_vm10, %v1470_v15  ;;  %v1403_v13 = vadd.f32 %v2115_v11, %v1402_v19 }
 0x373   : > { %v1432_v20 = vadd.f32 %v1431_v16, %v1403_v13 }
 0x375   : > { %v1461_v5 = vadd.f32 %v1460_v53, %v1432_v20 }
 0x376   : > { %v1433_v18 = vpop.f32.mrf.mxu2 }
 0x377   : > { %v1471_v17 = vmax.f32 %v1461_v5, 0.0 }
 0x378   : > { %v1404_v58 = vpop.f32.mrf.mxu1 }
 0x379   : > { %1479 = vst.msk [vmem:[%s2905_s25 + $0x30] sm:$0xff] %vm787_vm10, %v1471_v17  ;;  %v1405_v28 = vadd.f32 %v2115_v11, %v1404_v58 }
 0x37b   : > { %v1434_v25 = vadd.f32 %v1433_v18, %v1405_v28 }
 0x37d   : > { %v1463_v6 = vadd.f32 %v1462_v50, %v1434_v25 }
 0x37f   : > { %v1472_v30 = vmax.f32 %v1463_v6, 0.0 }
 0x381   : > { %1480 = vst.msk [vmem:[%s2905_s25 + $0x38] sm:$0xff] %vm787_vm10, %v1472_v30 }
 0x382   : > { %2143 = shalt.err (!%p2140_p3)
}
 0x383   : > { %s2193_s8 = smov 128  }
 0x384   : > { %1681 = dma.vmem_to_hbm [thread:$0]  (%p2262_p5), %s1495_s15, 1024, %s1497_s16, %s1482_s22, %s2193_s8, %s2193_s8, %s2183_s13  }
 0x385 PF: > { %p1687_p4 = scmp.ge.s32.totalorder %s2178_s21, 2  ;;  %s1511_s25 = sand.u32 1, %s2166_s18  }
 0x386   : > { %s1512_s10 = scalar_lea.sflag [#allocation3], %s1511_s25 }
 0x387   : > { %p1684_p7 = pnand %p1687_p4, %p2266_p6 }
 0x389   : > { %p1685_p8 = pneg %p1684_p7 }
 0x38b   : > { %2161 = dma.done.wait (%p1685_p8), %s1512_s10, 1024  }
 0x38c   : > { %2163 = vsyncadd (%p1685_p8), %s1512_s10, 4294966272  ;;  %p15_p9 = scmp.ge.s32.totalorder %s2249_s24, 4   ;;  %s2966_s18 = smov %s2170_s19 }
 0x38d   : > { %s2967_s19 = smov %s2174_s20  ;;  %s2968_s20 = smov %s2260_s27 }
 0x38e   : > { %s2969_s21 = smov %s2249_s24  ;;  %17 = sbr.rel (!%p15_p9) target bundleno = 3 (0x3), region = 75 }
 0x393   :  { %1518 = vsyncpa [#allocation3], 1 }
 0x394   :  { %1520 = vsyncpa [#allocation3 + $0x1], 1 }

</bundles_post_ra>
